<compile_context>
chip_gen: v7x
topology: tpu7x:2x2x1
jax: 0.10.0
libtpu: 0.0.40
codegen_flags: <defaults>
</compile_context>

<pallas_src>
import functools

import jax
import jax.numpy as jnp
from jax.experimental import pallas as pl
from jax.experimental.pallas import tpu as pltpu


HIDDEN = 64          # CVAE hidden width (fixed by the module)
OUT_PAD = 128        # lane-dense output slab width


def cvae_kernel(
    xy_ref, eps_ref,
    w_e1_ref, w_e2_ref, w_mls_ref, w_d1z_ref, w_d2_ref, w_out_ref,
    bias_ref,
    out_ref,
    *, hidden, latent_size,
):
    f32 = jnp.float32
    bf16 = jnp.bfloat16
    H = hidden
    L = latent_size

    # packed biases: one row each, 128-lane aligned
    b_e1 = bias_ref[0:1, :H]
    b_e2 = bias_ref[1:2, :H]
    b_mls = bias_ref[2:3, :2 * L]
    b_d1 = bias_ref[3:4, :H]
    b_d2 = bias_ref[4:5, :H]
    b_out = bias_ref[5:6, :]

    xy = xy_ref[...]       # bf16 [tb, F + Y]
    eps = eps_ref[...]     # f32  [tb, L]

    # ---- encoder layer 1 (fc_d1's y-projection folded into the same matmul) ----
    # columns [0:H]  -> fc_e1 pre-activation
    # columns [H:2H] -> y @ W_d1y  (x rows of the weight are zero)
    h1full = jnp.dot(xy, w_e1_ref[...], preferred_element_type=f32)   # [tb, 2H]
    h1 = jnp.maximum(h1full[:, :H] + b_e1, 0.0)
    y_d1 = h1full[:, H:]

    # ---- encoder layer 2 ----
    h2 = jnp.maximum(
        jnp.dot(h1.astype(bf16), w_e2_ref[...], preferred_element_type=f32) + b_e2,
        0.0)

    # ---- fused mu / log_std head (needed mid-kernel for the reparametrization) ----
    mls = jnp.dot(h2.astype(bf16), w_mls_ref[...], preferred_element_type=f32) + b_mls
    mu = mls[:, :L]
    log_std = mls[:, L:]

    # ---- reparametrize (f32 element-wise; exp goes to the EUP) ----
    z = mu + eps * jnp.exp(log_std)

    # ---- decoder ----
    h3 = jnp.maximum(
        jnp.dot(z.astype(bf16), w_d1z_ref[...], preferred_element_type=f32)
        + y_d1 + b_d1,
        0.0)
    h4 = jnp.maximum(
        jnp.dot(h3.astype(bf16), w_d2_ref[...], preferred_element_type=f32) + b_d2,
        0.0)

    # ---- single lane-dense output slab: [embed | res | mu | log_std | 0...] ----
    # One matmul over [h4 | h2]; the mu/log_std columns only see the h2 rows
    # (h4 rows are exact zeros in w_out), so they match `mls` above exactly.
    h4h2 = jnp.concatenate([h4, h2], axis=1).astype(bf16)             # [tb, 2H]
    out_ref[...] = (
        jnp.dot(h4h2, w_out_ref[...], preferred_element_type=f32) + b_out)


def _pick_batch_tile(B, max_tile):
    """Prefer exactly 2 grid steps (v7x: shards across both TCs) with the largest
    tile that fits; otherwise a single full-batch tile; otherwise the largest
    multiple-of-8 divisor of B that fits under max_tile."""
    if B % 16 == 0 and B // 2 <= max_tile:
        return B // 2
    if B <= max_tile:
        return B
    tb = (max_tile // 8) * 8
    while tb >= 8:
        if B % tb == 0:
            return tb
        tb -= 8
    return B   # no aligned divisor; fall back to one (large) tile


def cvae_forward(x, y, eps, params, *, batch_tile=2048):
    """x: [B, feature], y: [B, y_input], eps: [B, latent].
    Returns (embed, res, mu, log_std)."""
    B, F = x.shape
    Y = y.shape[1]
    L = eps.shape[1]
    H = HIDDEN
    n_heads = 3 + Y
    n_cols = n_heads + 2 * L
    assert n_cols <= OUT_PAD, "output slab must fit in 128 lanes"

    tb = _pick_batch_tile(B, batch_tile)
    assert B % tb == 0 and (tb == B or tb % 8 == 0), \
        "batch must be divisible by a multiple-of-8 tile"

    # pre-concatenate encoder input; bf16 MXU operands (f32 accumulation in-kernel)
    xy = jnp.concatenate([x, y], axis=1).astype(jnp.bfloat16)
    eps = eps.astype(jnp.float32)

    w_e1, w_e2, w_mls, w_d1z, w_d2, w_out, biases = params

    grid = (B // tb,)
    batch_map = lambda i: (i, 0)
    const_map = lambda i: (0, 0)     # weights/biases stay VMEM-resident across steps

    in_specs = [
        pl.BlockSpec((tb, F + Y), batch_map),
        pl.BlockSpec((tb, L), batch_map),
    ] + [pl.BlockSpec(p.shape, const_map)
         for p in (w_e1, w_e2, w_mls, w_d1z, w_d2, w_out, biases)]

    out_specs = pl.BlockSpec((tb, OUT_PAD), batch_map)
    out_shape = jax.ShapeDtypeStruct((B, OUT_PAD), jnp.float32)

    # advisory cost estimate for XLA's scheduler
    kn_sum = ((F + Y) * 2 * H + H * H + H * 2 * L + L * H + H * H
              + 2 * H * OUT_PAD)
    param_bytes = sum(int(p.size) * p.dtype.itemsize
                      for p in (w_e1, w_e2, w_mls, w_d1z, w_d2, w_out, biases))
    cost = pl.CostEstimate(
        flops=2 * B * kn_sum,
        transcendentals=B * L,
        bytes_accessed=int(xy.size) * 2 + int(eps.size) * 4 + param_bytes
        + B * OUT_PAD * 4)

    slab = pl.pallas_call(
        functools.partial(cvae_kernel, hidden=H, latent_size=L),
        out_shape=out_shape,
        grid=grid,
        in_specs=in_specs,
        out_specs=out_specs,
        compiler_params=pltpu.CompilerParams(
            dimension_semantics=("parallel",)),
        cost_estimate=cost,
    )(xy, eps, w_e1, w_e2, w_mls, w_d1z, w_d2, w_out, biases)

    embed = slab[:, :3]
    res = slab[:, 3:3 + Y]
    mu = slab[:, 3 + Y:3 + Y + L]
    log_std = slab[:, 3 + Y + L:3 + Y + 2 * L]
    return embed, res, mu, log_std


def make_layer_params(key, feature_size, y_input_size, latent_size, hidden=HIDDEN):
    """Deterministic synthetic per-layer parameters (weights stored [in, out])."""
    ks = jax.random.split(key, 16)

    def w(k, i, o):
        return (0.1 * jax.random.normal(k, (i, o))).astype(jnp.float32)

    def b(k, o):
        return (0.1 * jax.random.normal(k, (o,))).astype(jnp.float32)

    return dict(
        w_e1=w(ks[0], feature_size + y_input_size, hidden), b_e1=b(ks[1], hidden),
        w_e2=w(ks[2], hidden, hidden), b_e2=b(ks[3], hidden),
        w_mu=w(ks[4], hidden, latent_size), b_mu=b(ks[5], latent_size),
        w_ls=w(ks[6], hidden, latent_size), b_ls=b(ks[7], latent_size),
        w_d1=w(ks[8], latent_size + y_input_size, hidden), b_d1=b(ks[9], hidden),
        w_d2=w(ks[10], hidden, hidden), b_d2=b(ks[11], hidden),
        w_embed=w(ks[12], hidden, 3), b_embed=b(ks[13], 3),
        w_res=w(ks[14], hidden, y_input_size), b_res=b(ks[15], y_input_size),
    )


def pack_params(layers, *, hidden=HIDDEN, out_pad=OUT_PAD):
    """Fuse / pack per-layer weights into the kernel operand layout."""
    f32, bf = jnp.float32, jnp.bfloat16
    F_Y = layers["w_e1"].shape[0]
    Y = layers["w_res"].shape[1]
    L = layers["w_mu"].shape[1]
    F = F_Y - Y
    n_heads = 3 + Y
    n_cols = n_heads + 2 * L

    # fc_d1 split into z-rows / y-rows
    w_d1z = layers["w_d1"][:L]                       # [L, H]
    w_d1y = layers["w_d1"][L:]                       # [Y, H]

    # fc_e1 augmented with fc_d1's y-columns: [F+Y, 2H], zero on the x rows
    aug = jnp.concatenate([jnp.zeros((F, hidden), f32), w_d1y], axis=0)
    w_e1aug = jnp.concatenate([layers["w_e1"], aug], axis=1)

    # fused mu / log_std head
    w_mls = jnp.concatenate([layers["w_mu"], layers["w_ls"]], axis=1)   # [H, 2L]
    b_mls = jnp.concatenate([layers["b_mu"], layers["b_ls"]], axis=0)   # [2L]

    # final fused output matmul over [h4 | h2] -> [embed | res | mu | log_std | 0]
    w_out = jnp.zeros((2 * hidden, out_pad), f32)
    w_out = w_out.at[:hidden, 0:3].set(layers["w_embed"])
    w_out = w_out.at[:hidden, 3:3 + Y].set(layers["w_res"])
    w_out = w_out.at[hidden:, n_heads:n_cols].set(w_mls)
    b_out = jnp.zeros((out_pad,), f32)
    b_out = b_out.at[0:3].set(layers["b_embed"])
    b_out = b_out.at[3:3 + Y].set(layers["b_res"])
    b_out = b_out.at[n_heads:n_cols].set(b_mls)

    # all biases packed one-per-row, 128-lane aligned
    def pad_row(v):
        return jnp.zeros((out_pad,), f32).at[:v.shape[0]].set(v)
    biases = jnp.stack([
        pad_row(layers["b_e1"]), pad_row(layers["b_e2"]), pad_row(b_mls),
        pad_row(layers["b_d1"]), pad_row(layers["b_d2"]), b_out], axis=0)

    return (w_e1aug.astype(bf), layers["w_e2"].astype(bf), w_mls.astype(bf),
            w_d1z.astype(bf), layers["w_d2"].astype(bf), w_out.astype(bf),
            biases)


def ref_forward(x, y, eps, layers):
    """Pure-JAX CVAE reference (unfused layers) with the same bf16-operand /
    f32-accumulate matmul math as the kernel.  Matches the PyTorch forward
    (with the dead tanh on `res` dropped)."""
    f32, bf = jnp.float32, jnp.bfloat16

    def mm(a, w):
        return jnp.dot(a.astype(bf), w.astype(bf), preferred_element_type=f32)

    xy = jnp.concatenate([x, y], axis=1)
    h1 = jax.nn.relu(mm(xy, layers["w_e1"]) + layers["b_e1"])
    h2 = jax.nn.relu(mm(h1, layers["w_e2"]) + layers["b_e2"])
    mu = mm(h2, layers["w_mu"]) + layers["b_mu"]
    log_std = mm(h2, layers["w_ls"]) + layers["b_ls"]
    z = mu + eps * jnp.exp(log_std)
    zy = jnp.concatenate([z, y], axis=1)
    h3 = jax.nn.relu(mm(zy, layers["w_d1"]) + layers["b_d1"])
    h4 = jax.nn.relu(mm(h3, layers["w_d2"]) + layers["b_d2"])
    embed = mm(h4, layers["w_embed"]) + layers["b_embed"]
    res = mm(h4, layers["w_res"]) + layers["b_res"]
    return embed, res, mu, log_std


if __name__ == "__main__":
    # Small shapes consistent with the module's forward; batch chosen to exercise
    # the batch grid (2 steps of a 128-row tile via the tile picker).
    B = 256
    feature_size = 16
    y_input_size = 8
    latent_size = 4

    key = jax.random.PRNGKey(0)
    k_x, k_y, k_eps, k_p = jax.random.split(key, 4)

    x = jax.random.normal(k_x, (B, feature_size), dtype=jnp.float32)
    y = jax.random.normal(k_y, (B, y_input_size), dtype=jnp.float32)
    # reparametrization noise (torch.randn_like equivalent), made deterministic
    eps = jax.random.normal(k_eps, (B, latent_size), dtype=jnp.float32)

    layers = make_layer_params(k_p, feature_size, y_input_size, latent_size)
    params = pack_params(layers)

    embed, res, mu, log_std = cvae_forward(x, y, eps, params)
    jax.block_until_ready((embed, res, mu, log_std))

    embed_r, res_r, mu_r, ls_r = ref_forward(x, y, eps, layers)

    assert jnp.allclose(embed, embed_r, atol=2e-2, rtol=2e-2)
    assert jnp.allclose(res, res_r, atol=2e-2, rtol=2e-2)
    assert jnp.allclose(mu, mu_r, atol=2e-2, rtol=2e-2)
    assert jnp.allclose(log_std, ls_r, atol=2e-2, rtol=2e-2)

    print("KERNEL_OK")
</pallas_src>

<mosaic_0001>
module attributes {stable_mosaic.version = 11 : i64} {
  func.func @cvae_kernel(%arg0: i32, %arg1: memref<128x24xbf16, #tpu.memory_space<vmem>>, %arg2: memref<128x4xf32, #tpu.memory_space<vmem>>, %arg3: memref<24x128xbf16, #tpu.memory_space<vmem>>, %arg4: memref<64x64xbf16, #tpu.memory_space<vmem>>, %arg5: memref<64x8xbf16, #tpu.memory_space<vmem>>, %arg6: memref<4x64xbf16, #tpu.memory_space<vmem>>, %arg7: memref<64x64xbf16, #tpu.memory_space<vmem>>, %arg8: memref<128x128xbf16, #tpu.memory_space<vmem>>, %arg9: memref<6x128xf32, #tpu.memory_space<vmem>>, %arg10: memref<128x128xf32, #tpu.memory_space<vmem>>) attributes {dimension_semantics = [#tpu.dimension_semantics<parallel>], iteration_bounds = array<i64: 2>, scalar_prefetch = 0 : i64, scratch_operands = 0 : i64, tpu.core_type = #tpu.core_type<tc>, window_params = [{transform_indices = @transform_0, window_bounds = array<i64: 128, 24>}, {transform_indices = @transform_1, window_bounds = array<i64: 128, 4>}, {pipeline_mode = #tpu.pipeline_mode<synchronous>, transform_indices = @transform_2, window_bounds = array<i64: 24, 128>}, {pipeline_mode = #tpu.pipeline_mode<synchronous>, transform_indices = @transform_3, window_bounds = array<i64: 64, 64>}, {pipeline_mode = #tpu.pipeline_mode<synchronous>, transform_indices = @transform_4, window_bounds = array<i64: 64, 8>}, {pipeline_mode = #tpu.pipeline_mode<synchronous>, transform_indices = @transform_5, window_bounds = array<i64: 4, 64>}, {pipeline_mode = #tpu.pipeline_mode<synchronous>, transform_indices = @transform_6, window_bounds = array<i64: 64, 64>}, {pipeline_mode = #tpu.pipeline_mode<synchronous>, transform_indices = @transform_7, window_bounds = array<i64: 128, 128>}, {pipeline_mode = #tpu.pipeline_mode<synchronous>, transform_indices = @transform_8, window_bounds = array<i64: 6, 128>}, {transform_indices = @transform_9, window_bounds = array<i64: 128, 128>}]} {
    %c0 = arith.constant 0 : index
    %c0_0 = arith.constant 0 : index
    %0 = vector.load %arg9[%c0, %c0_0] : memref<6x128xf32, #tpu.memory_space<vmem>>, vector<1x64xf32>
    %c1 = arith.constant 1 : index
    %c0_1 = arith.constant 0 : index
    %1 = vector.load %arg9[%c1, %c0_1] : memref<6x128xf32, #tpu.memory_space<vmem>>, vector<1x64xf32>
    %c2 = arith.constant 2 : index
    %c0_2 = arith.constant 0 : index
    %2 = vector.load %arg9[%c2, %c0_2] : memref<6x128xf32, #tpu.memory_space<vmem>>, vector<1x8xf32>
    %c3 = arith.constant 3 : index
    %c0_3 = arith.constant 0 : index
    %3 = vector.load %arg9[%c3, %c0_3] : memref<6x128xf32, #tpu.memory_space<vmem>>, vector<1x64xf32>
    %c4 = arith.constant 4 : index
    %c0_4 = arith.constant 0 : index
    %4 = vector.load %arg9[%c4, %c0_4] : memref<6x128xf32, #tpu.memory_space<vmem>>, vector<1x64xf32>
    %c5 = arith.constant 5 : index
    %c0_5 = arith.constant 0 : index
    %5 = vector.load %arg9[%c5, %c0_5] : memref<6x128xf32, #tpu.memory_space<vmem>>, vector<1x128xf32>
    %c0_6 = arith.constant 0 : index
    %c0_7 = arith.constant 0 : index
    %6 = vector.load %arg1[%c0_6, %c0_7] : memref<128x24xbf16, #tpu.memory_space<vmem>>, vector<128x24xbf16>
    %c0_8 = arith.constant 0 : index
    %c0_9 = arith.constant 0 : index
    %7 = vector.load %arg2[%c0_8, %c0_9] : memref<128x4xf32, #tpu.memory_space<vmem>>, vector<128x4xf32>
    %c0_10 = arith.constant 0 : index
    %c0_11 = arith.constant 0 : index
    %8 = vector.load %arg3[%c0_10, %c0_11] : memref<24x128xbf16, #tpu.memory_space<vmem>>, vector<24x128xbf16>
    %cst = arith.constant dense<0.000000e+00> : vector<128x128xf32>
    %9 = tpu.matmul %6, %8, %cst {dimension_numbers = #tpu.dot_dimension_numbers<[1], [0], [0], [1], [0, 0, 1, 1], [], []>} : vector<128x24xbf16>, vector<24x128xbf16>, vector<128x128xf32> -> vector<128x128xf32>
    %10 = vector.extract_strided_slice %9 {offsets = [0, 0], sizes = [128, 64], strides = [1, 1]} : vector<128x128xf32> to vector<128x64xf32>
    %11 = vector.broadcast %0 : vector<1x64xf32> to vector<128x64xf32>
    %12 = arith.addf %10, %11 : vector<128x64xf32>
    %cst_12 = arith.constant 0.000000e+00 : f32
    %13 = vector.broadcast %cst_12 : f32 to vector<128x64xf32>
    %14 = arith.maximumf %12, %13 : vector<128x64xf32>
    %15 = vector.extract_strided_slice %9 {offsets = [0, 64], sizes = [128, 64], strides = [1, 1]} : vector<128x128xf32> to vector<128x64xf32>
    %16 = arith.truncf %14 : vector<128x64xf32> to vector<128x64xbf16>
    %c0_13 = arith.constant 0 : index
    %c0_14 = arith.constant 0 : index
    %17 = vector.load %arg4[%c0_13, %c0_14] : memref<64x64xbf16, #tpu.memory_space<vmem>>, vector<64x64xbf16>
    %cst_15 = arith.constant dense<0.000000e+00> : vector<128x64xf32>
    %18 = tpu.matmul %16, %17, %cst_15 {dimension_numbers = #tpu.dot_dimension_numbers<[1], [0], [0], [1], [0, 0, 1, 1], [], []>} : vector<128x64xbf16>, vector<64x64xbf16>, vector<128x64xf32> -> vector<128x64xf32>
    %19 = vector.broadcast %1 : vector<1x64xf32> to vector<128x64xf32>
    %20 = arith.addf %18, %19 : vector<128x64xf32>
    %cst_16 = arith.constant 0.000000e+00 : f32
    %21 = vector.broadcast %cst_16 : f32 to vector<128x64xf32>
    %22 = arith.maximumf %20, %21 : vector<128x64xf32>
    %23 = arith.truncf %22 : vector<128x64xf32> to vector<128x64xbf16>
    %c0_17 = arith.constant 0 : index
    %c0_18 = arith.constant 0 : index
    %24 = vector.load %arg5[%c0_17, %c0_18] : memref<64x8xbf16, #tpu.memory_space<vmem>>, vector<64x8xbf16>
    %cst_19 = arith.constant dense<0.000000e+00> : vector<128x8xf32>
    %25 = tpu.matmul %23, %24, %cst_19 {dimension_numbers = #tpu.dot_dimension_numbers<[1], [0], [0], [1], [0, 0, 1, 1], [], []>} : vector<128x64xbf16>, vector<64x8xbf16>, vector<128x8xf32> -> vector<128x8xf32>
    %26 = vector.broadcast %2 : vector<1x8xf32> to vector<128x8xf32>
    %27 = arith.addf %25, %26 : vector<128x8xf32>
    %28 = vector.extract_strided_slice %27 {offsets = [0, 0], sizes = [128, 4], strides = [1, 1]} : vector<128x8xf32> to vector<128x4xf32>
    %29 = vector.extract_strided_slice %27 {offsets = [0, 4], sizes = [128, 4], strides = [1, 1]} : vector<128x8xf32> to vector<128x4xf32>
    %30 = math.exp %29 : vector<128x4xf32>
    %31 = arith.mulf %7, %30 : vector<128x4xf32>
    %32 = arith.addf %28, %31 : vector<128x4xf32>
    %33 = arith.truncf %32 : vector<128x4xf32> to vector<128x4xbf16>
    %c0_20 = arith.constant 0 : index
    %c0_21 = arith.constant 0 : index
    %34 = vector.load %arg6[%c0_20, %c0_21] : memref<4x64xbf16, #tpu.memory_space<vmem>>, vector<4x64xbf16>
    %cst_22 = arith.constant dense<0.000000e+00> : vector<128x64xf32>
    %35 = tpu.matmul %33, %34, %cst_22 {dimension_numbers = #tpu.dot_dimension_numbers<[1], [0], [0], [1], [0, 0, 1, 1], [], []>} : vector<128x4xbf16>, vector<4x64xbf16>, vector<128x64xf32> -> vector<128x64xf32>
    %36 = arith.addf %35, %15 : vector<128x64xf32>
    %37 = vector.broadcast %3 : vector<1x64xf32> to vector<128x64xf32>
    %38 = arith.addf %36, %37 : vector<128x64xf32>
    %cst_23 = arith.constant 0.000000e+00 : f32
    %39 = vector.broadcast %cst_23 : f32 to vector<128x64xf32>
    %40 = arith.maximumf %38, %39 : vector<128x64xf32>
    %41 = arith.truncf %40 : vector<128x64xf32> to vector<128x64xbf16>
    %c0_24 = arith.constant 0 : index
    %c0_25 = arith.constant 0 : index
    %42 = vector.load %arg7[%c0_24, %c0_25] : memref<64x64xbf16, #tpu.memory_space<vmem>>, vector<64x64xbf16>
    %cst_26 = arith.constant dense<0.000000e+00> : vector<128x64xf32>
    %43 = tpu.matmul %41, %42, %cst_26 {dimension_numbers = #tpu.dot_dimension_numbers<[1], [0], [0], [1], [0, 0, 1, 1], [], []>} : vector<128x64xbf16>, vector<64x64xbf16>, vector<128x64xf32> -> vector<128x64xf32>
    %44 = vector.broadcast %4 : vector<1x64xf32> to vector<128x64xf32>
    %45 = arith.addf %43, %44 : vector<128x64xf32>
    %cst_27 = arith.constant 0.000000e+00 : f32
    %46 = vector.broadcast %cst_27 : f32 to vector<128x64xf32>
    %47 = arith.maximumf %45, %46 : vector<128x64xf32>
    %48 = tpu.concatenate %47, %22 in 1 : vector<128x64xf32>, vector<128x64xf32> -> vector<128x128xf32>
    %49 = arith.truncf %48 : vector<128x128xf32> to vector<128x128xbf16>
    %c0_28 = arith.constant 0 : index
    %c0_29 = arith.constant 0 : index
    %50 = vector.load %arg8[%c0_28, %c0_29] : memref<128x128xbf16, #tpu.memory_space<vmem>>, vector<128x128xbf16>
    %cst_30 = arith.constant dense<0.000000e+00> : vector<128x128xf32>
    %51 = tpu.matmul %49, %50, %cst_30 {dimension_numbers = #tpu.dot_dimension_numbers<[1], [0], [0], [1], [0, 0, 1, 1], [], []>} : vector<128x128xbf16>, vector<128x128xbf16>, vector<128x128xf32> -> vector<128x128xf32>
    %52 = vector.broadcast %5 : vector<1x128xf32> to vector<128x128xf32>
    %53 = arith.addf %51, %52 : vector<128x128xf32>
    %c0_31 = arith.constant 0 : index
    %c0_32 = arith.constant 0 : index
    %54 = vector.load %arg10[%c0_31, %c0_32] : memref<128x128xf32, #tpu.memory_space<vmem>>, vector<128x128xf32>
    tpu.vector_store %arg10[%c0_31, %c0_32], %53 {strides = array<i32>} : memref<128x128xf32, #tpu.memory_space<vmem>>, vector<128x128xf32>,
    return
  }
  func.func @transform_0(%arg0: i32) -> (i32, i32) {
    %c0_i32 = arith.constant 0 : i32
    %c0_i32_0 = arith.constant 0 : i32
    return %arg0, %c0_i32 : i32, i32
  }
  func.func @transform_1(%arg0: i32) -> (i32, i32) {
    %c0_i32 = arith.constant 0 : i32
    %c0_i32_0 = arith.constant 0 : i32
    return %arg0, %c0_i32 : i32, i32
  }
  func.func @transform_2(%arg0: i32) -> (i32, i32) {
    %c0_i32 = arith.constant 0 : i32
    %c0_i32_0 = arith.constant 0 : i32
    %c0_i32_1 = arith.constant 0 : i32
    return %c0_i32, %c0_i32_0 : i32, i32
  }
  func.func @transform_3(%arg0: i32) -> (i32, i32) {
    %c0_i32 = arith.constant 0 : i32
    %c0_i32_0 = arith.constant 0 : i32
    %c0_i32_1 = arith.constant 0 : i32
    return %c0_i32, %c0_i32_0 : i32, i32
  }
  func.func @transform_4(%arg0: i32) -> (i32, i32) {
    %c0_i32 = arith.constant 0 : i32
    %c0_i32_0 = arith.constant 0 : i32
    %c0_i32_1 = arith.constant 0 : i32
    return %c0_i32, %c0_i32_0 : i32, i32
  }
  func.func @transform_5(%arg0: i32) -> (i32, i32) {
    %c0_i32 = arith.constant 0 : i32
    %c0_i32_0 = arith.constant 0 : i32
    %c0_i32_1 = arith.constant 0 : i32
    return %c0_i32, %c0_i32_0 : i32, i32
  }
  func.func @transform_6(%arg0: i32) -> (i32, i32) {
    %c0_i32 = arith.constant 0 : i32
    %c0_i32_0 = arith.constant 0 : i32
    %c0_i32_1 = arith.constant 0 : i32
    return %c0_i32, %c0_i32_0 : i32, i32
  }
  func.func @transform_7(%arg0: i32) -> (i32, i32) {
    %c0_i32 = arith.constant 0 : i32
    %c0_i32_0 = arith.constant 0 : i32
    %c0_i32_1 = arith.constant 0 : i32
    return %c0_i32, %c0_i32_0 : i32, i32
  }
  func.func @transform_8(%arg0: i32) -> (i32, i32) {
    %c0_i32 = arith.constant 0 : i32
    %c0_i32_0 = arith.constant 0 : i32
    %c0_i32_1 = arith.constant 0 : i32
    return %c0_i32, %c0_i32_0 : i32, i32
  }
  func.func @transform_9(%arg0: i32) -> (i32, i32) {
    %c0_i32 = arith.constant 0 : i32
    %c0_i32_0 = arith.constant 0 : i32
    return %arg0, %c0_i32 : i32, i32
  }
}

</mosaic_0001>

<bundles_post_ra>
// kernel: tpu_custom_call.1
= control target key start
LH: loop header
LB: loop body
LE: loop exit
PB: predicated region body
PF: predicated region fallthrough
CT: control target
= control target key end

     0   :  { %14 = vsyncpa [#allocation3], 0  ;;  %s2966_s0 = inlined_call_operand.vmem [shape: bf16[256,24], index: 0, kind: input, shape index: {}]   ;;  %s2967_s1 = inlined_call_operand.vmem [shape: f32[256,4], index: 1, kind: input, shape index: {}]   ;;  %s2968_s2 = inlined_call_operand.vmem [shape: bf16[24,128], index: 2, kind: input, shape index: {}]   ;;  %s2969_s3 = inlined_call_operand.vmem [shape: bf16[64,64], index: 3, kind: input, shape index: {}]   ;;  %s2970_s4 = inlined_call_operand.vmem [shape: bf16[64,8], index: 4, kind: input, shape index: {}]   ;;  %s2971_s5 = inlined_call_operand.vmem [shape: bf16[4,64], index: 5, kind: input, shape index: {}]   ;;  %s2972_s6 = inlined_call_operand.vmem [shape: bf16[64,64], index: 6, kind: input, shape index: {}]   ;;  %s2973_s7 = inlined_call_operand.vmem [shape: bf16[128,128], index: 7, kind: input, shape index: {}]   ;;  %s2974_s8 = inlined_call_operand.vmem [shape: f32[6,128], index: 8, kind: input, shape index: {}]   ;;  %s2975_s9 = inlined_call_operand.hbm [shape: f32[256,128], index: 9, kind: output, shape index: {}]  }
   0x1   :  { %16 = vsyncpa [#allocation3 + $0x1], 0  ;;  %s2427_s30 = smov 0   ;;  %s2429_s10 = smov 0  }
   0x2   :  { %s2431_s11 = smov 0   ;;  %s2433_s12 = smov 0  }
   0x3 LB: > { %s2448_s13 = sadd.s32 4294967295, %s2370_s12   ;;  %s1857_s14 = sadd.s32 4294967294, %s2370_s12   ;;  %s2370_s12 = sphi %s2433_s12, %s2981_s12   ;;  %s2366_s11 = sphi %s2431_s11, %s2980_s11   ;;  %s2362_s10 = sphi %s2429_s10, %s2979_s10   ;;  %s2358_s30 = sphi %s2427_s30, %s2978_s30  }
   0x4   : > { %s2452_s15 = sadd.s32 1, %s2370_s12   ;;  %s228_s16 = sadd.s32 1, %s2366_s11 }
   0x5   : > { %s225_s17 = ssub.s32 %s2370_s12, %s2452_s15  ;;  %p238_p0 = scmp.ne.s32.totalorder %s2366_s11, %s2362_s10 }
   0x6   : > { %p226_p1 = scmp.eq.s32.totalorder %s225_s17, 0  ;;  %p239_p2 = scmp.eq.s32.totalorder %s2448_s13, 1 }
   0x7   : > { %p244_p3 = scmp.ne.s32.totalorder %s2362_s10, %s2358_s30  ;;  %p245_p4 = scmp.eq.s32.totalorder %s1857_s14, 1 }
   0x8   : > { %s2463_s18 = scalar_select %p226_p1, %s2366_s11, %s228_s16  }
   0x9   : > { %p2465_p5 = por %p239_p2, %p238_p0  ;;  %p2469_p6 = por %p245_p4, %p244_p3 }
   0xa   : > { %p1860_p7 = scmp.ge.s32.totalorder %s2370_s12, 1  ;;  %p302_p8 = scmp.lt.s32.totalorder %s2370_s12, 3 }
   0xc   : > { %p303_p9 = pnand %p1860_p7, %p302_p8 }
   0xd   : > { %v2246_v0 = vld [vmem:[%s2968_s2] sm:$0xff] (!%p303_p9)   ;;  %v2247_v1 = vld [vmem:[%s2968_s2 + $0x8] ss:$0 sps:$4 sm:$0xff] (!%p303_p9)   ;;  %vm472_vm0 = vcmask (!%p303_p9), 1043456   ;;  %s1862_s25 = sshll.u32 (!%p303_p9), %s2448_s13, 4  ;;  %vm447_vm1 = vcmask (!%p303_p9), 195584  }
   0xe   : > { %306 = sbr.rel (%p303_p9) target bundleno = 1528 (0x5f8), region = 56  ;;  %2019 = vmatprep.subr.bf16.mxu0 (!%p303_p9), %v2246_v0  ;;  %p344_p10 = scmp.lt.s32.totalorder (!%p303_p9), %s1862_s25, 31  ;;  %v2256_v2 = vld [vmem:[%s2969_s3] sm:$0xff] (!%p303_p9)   ;;  %v2257_v3 = vld [vmem:[%s2969_s3 + $0x8] sm:$0xff] (!%p303_p9)   ;;  %v474_v4 = vsel (!%p303_p9), %vm472_vm0, %v2247_v1, 0  ;;  %v2258_v13 = vld [vmem:[%s2969_s3 + $0x10] sm:$0xff] (!%p303_p9)  }
   0xf   : > { %2020 = vmatpush3.bf16.msra.mxu0 (!%p303_p9), %v2246_v0  ;;  %2039 = vmatprep.subr.bf16.mxu1 (!%p303_p9), %v2256_v2  ;;  %v2259_v14 = vld [vmem:[%s2969_s3 + $0x18] sm:$0xff] (!%p303_p9)   ;;  %v2260_v15 = vld [vmem:[%s2970_s4] sm:$0xff] (!%p303_p9)   ;;  %v2261_v16 = vld [vmem:[%s2970_s4 + $0x8] sm:$0xff] (!%p303_p9)   ;;  %vm653_vm2 = vcmask (!%p303_p9), 523264   ;;  %vm1182_vm3 = vcmask (!%p303_p9), 1041408   ;;  %s2372_s17 = smov (!%p303_p9), 124  }
  0x10   : > { %2161 = vmatprep.subr.msk.bf16.mxu0 (!%p303_p9), %vm472_vm0, %v2247_v1  ;;  %2040 = vmatpush3.bf16.msra.mxu1 (!%p303_p9), %v2256_v2  ;;  %v2262_v17 = vld [vmem:[%s2970_s4 + $0x10] sm:$0xff] (!%p303_p9)   ;;  %v1884_v18 = vld [vmem:[%s2974_s8] ss:$0 sm:$0xff] (!%p303_p9)  ;;  %vm1157_vm4 = vcmask (!%p303_p9), 31744   ;;  %s340_s16 = sand.u32 (!%p303_p9), 1, %s2362_s10   ;;  %s1947_s23 = sshll.u32 (!%p303_p9), %s2448_s13, 11 }
  0x11   : > { %2041 = vmatprep.subr.bf16.mxu1 (!%p303_p9), %v2257_v3  ;;  %s2916_s28 = scalar_lea.hbm (!%p303_p9), %s2975_s9, %s1947_s23  ;;  %s2925_s13 = scalar_lea.sflag (!%p303_p9), [#allocation3], %s340_s16 }
  0x13   : > { %2022 = vmatpush3.bf16.msra.mxu0 (!%p303_p9), %v474_v4 }
  0x14   : > { %2042 = vmatpush3.bf16.msra.mxu1 (!%p303_p9), %v2257_v3  ;;  %2063 = vmatprep.subr.bf16.mxu0 (!%p303_p9), %v2260_v15 }
  0x15   : > { %s2983_s25 = smov (!%p344_p10, %s1862_s25), 31  ;;  %2043 = vmatprep.subr.bf16.mxu1 %v2258_v13 }
  0x16   : > { %s1863_s14 = sshll.u32 %s2983_s25, 2  ;;  %s1865_s29 = sshll.u32 %s2983_s25, 3 }
  0x17   : > { %s347_s21 = scalar_lea.vmem %s2966_s0, %s1863_s14  ;;  %s2374_s14 = smov [#allocation2]  }
  0x18   : > { %v2248_v5 = vld [vmem:[%s347_s21] sm:$0xff]   ;;  %v2249_v6 = vld [vmem:[%s347_s21 + $0x8] sm:$0xff]   ;;  %v2250_v7 = vld [vmem:[%s347_s21 + $0x10] sm:$0xff]   ;;  %2044 = vmatpush3.bf16.msra.mxu1 %v2258_v13 }
  0x19   : > { %2023 = vmatprep.mubr.msk.bf16.mxu0 %vm447_vm1, %v2248_v5  ;;  %v2251_v8 = vld [vmem:[%s347_s21 + $0x18] sm:$0xff]   ;;  %v2252_v9 = vld [vmem:[%s347_s21 + $0x20] sm:$0xff]   ;;  %v2253_v10 = vld [vmem:[%s347_s21 + $0x28] sm:$0xff]   ;;  %2045 = vmatprep.subr.bf16.mxu1 %v2259_v14 }
  0x1a   : > { %2024 = vmatmul.mubr.msk.bf16.vlgmr.msra.gmra.mrb[0].mxu0 %vm447_vm1, %v2249_v6  ;;  %v2254_v11 = vld [vmem:[%s347_s21 + $0x30] sm:$0xff]   ;;  %v2255_v12 = vld [vmem:[%s347_s21 + $0x38] sm:$0xff]   ;;  %s2373_s21 = smov 64  }
  0x1b   : > { %2027 = vmatprep.mubr.msk.bf16.mxu0 %vm447_vm1, %v2250_v7  ;;  %2064 = vmatpush3.bf16.msra.mxu0 %v2260_v15 }
  0x1c   : > { %2046 = vmatpush3.bf16.msra.mxu1 %v2259_v14  ;;  %2065 = vmatprep.subr.bf16.mxu0 %v2261_v16 }
  0x1f   : > { %2066 = vmatpush3.bf16.msra.mxu0 %v2261_v16 }
  0x20   : > { %2067 = vmatprep.subr.bf16.mxu0 %v2262_v17 }
  0x22   : > { %2028 = vmatmul.mubr.msk.bf16.gmra.mrb[4].mxu0 %vm447_vm1, %v2251_v8 }
  0x23   : > { %2031 = vmatprep.mubr.msk.bf16.mxu0 %vm447_vm1, %v2252_v9  ;;  %2068 = vmatpush3.bf16.msra.mxu0 %v2262_v17 }
  0x2a   : > { %2032 = vmatmul.mubr.msk.bf16.gmra.mrb[8].mxu0 %vm447_vm1, %v2253_v10 }
  0x2b   : > { %2035 = vmatprep.mubr.msk.bf16.mxu0 %vm447_vm1, %v2254_v11  ;;  %v2263_v11 = vld [vmem:[%s2970_s4 + $0x18] sm:$0xff]  }
  0x2c   : > { %2069 = vmatprep.subr.bf16.mxu0 %v2263_v11 }
  0x2d   : > { %2070 = vmatpush3.bf16.msra.mxu0 %v2263_v11 }
  0x32   : > { %2036 = vmatmul.mubr.msk.bf16.gmra.mrb[12].mxu0 %vm447_vm1, %v2255_v12  ;;  %v1885_v12 = vld [vmem:[%s2974_s8 + $0x1] ss:$0 sm:$0xff] }
  0xed   : > { %v2520_v19 = vpop.f32.mrb[0].mxu0 }
  0xee   : > { %v579_v20 = vadd.f32 %v2520_v19, %v1884_v18  ;;  %v2523_v21 = vpop.f32.mrb[1].mxu0 }
  0xef   : > { %v577_v22 = vadd.f32 %v1884_v18, %v2523_v21  ;;  %v2526_v23 = vpop.f32.mrb[2].mxu0 }
  0xf0   : > { %v580_v24 = vadd.f32 %v2526_v23, %v1884_v18  ;;  %v2529_v25 = vpop.f32.mrb[3].mxu0  ;;  %v595_v27 = vmax.f32 %v579_v20, 0.0 }
  0xf1   : > { %v578_v26 = vadd.f32 %v1884_v18, %v2529_v25  ;;  %v593_v29 = vmax.f32 %v577_v22, 0.0 }
  0xf2   : > { %v596_v28 = vmax.f32 %v580_v24, 0.0 }
  0xf3   : > { %v594_v30 = vmax.f32 %v578_v26, 0.0 }
  0xf4   : > { %v610_v31 = vpack.c.bf16 %v596_v28, %v595_v27 }
  0xf5   : > { %v2532_v32 = vpop.f32.mrb[4].mxu0  ;;  %v609_v33 = vpack.c.bf16 %v594_v30, %v593_v29 }
  0xf6   : > { %v583_v34 = vadd.f32 %v2532_v32, %v1884_v18  ;;  %v2535_v35 = vpop.f32.mrb[5].mxu0 }
  0xf7   : > { %v581_v36 = vadd.f32 %v1884_v18, %v2535_v35  ;;  %v2538_v37 = vpop.f32.mrb[6].mxu0  ;;  %2047 = vmatprep.mubr.msk.bf16.mxu1 %vm653_vm2, %v609_v33 }
  0xf8   : > { %v584_v38 = vadd.f32 %v2538_v37, %v1884_v18  ;;  %v2542_v39 = vpop.f32.mrb[7].mxu0  ;;  %2048 = vmatmul.mubr.msk.bf16.vlgmr.msra.gmra.mrb[0].mxu1 %vm653_vm2, %v610_v31  ;;  %v599_v41 = vmax.f32 %v583_v34, 0.0 }
  0xf9   : > { %v582_v40 = vadd.f32 %v1884_v18, %v2542_v39  ;;  %v597_v43 = vmax.f32 %v581_v36, 0.0 }
  0xfa   : > { %v600_v42 = vmax.f32 %v584_v38, 0.0 }
  0xfb   : > { %v598_v44 = vmax.f32 %v582_v40, 0.0 }
  0xfc   : > { %v612_v45 = vpack.c.bf16 %v600_v42, %v599_v41 }
  0xfd   : > { %v611_v46 = vpack.c.bf16 %v598_v44, %v597_v43  ;;  %v2546_v47 = vpop.f32.mrb[8].mxu0 }
  0xfe   : > { %v587_v48 = vadd.f32 %v2546_v47, %v1884_v18  ;;  %v2549_v49 = vpop.f32.mrb[9].mxu0 }
  0xff   : > { %v585_v50 = vadd.f32 %v1884_v18, %v2549_v49  ;;  %v2552_v51 = vpop.f32.mrb[10].mxu0  ;;  %2051 = vmatprep.mubr.msk.bf16.mxu1 %vm653_vm2, %v611_v46 }
 0x100   : > { %v588_v52 = vadd.f32 %v2552_v51, %v1884_v18  ;;  %v2556_v53 = vpop.f32.mrb[11].mxu0  ;;  %2052 = vmatmul.mubr.msk.bf16.gmra.mrb[4].mxu1 %vm653_vm2, %v612_v45  ;;  %v603_v55 = vmax.f32 %v587_v48, 0.0 }
 0x101   : > { %v586_v54 = vadd.f32 %v1884_v18, %v2556_v53  ;;  %v601_v57 = vmax.f32 %v585_v50, 0.0 }
 0x102   : > { %v604_v56 = vmax.f32 %v588_v52, 0.0 }
 0x103   : > { %v602_v58 = vmax.f32 %v586_v54, 0.0 }
 0x104   : > { %v614_v59 = vpack.c.bf16 %v604_v56, %v603_v55 }
 0x105   : > { %v613_v60 = vpack.c.bf16 %v602_v58, %v601_v57  ;;  %v2560_v61 = vpop.f32.mrb[12].mxu0 }
 0x106   : > { %v591_v62 = vadd.f32 %v2560_v61, %v1884_v18  ;;  %v2563_v63 = vpop.f32.mrb[13].mxu0 }
 0x107   : > { %v589_v0 = vadd.f32 %v1884_v18, %v2563_v63  ;;  %v2566_v1 = vpop.f32.mrb[14].mxu0  ;;  %2055 = vmatprep.mubr.msk.bf16.mxu1 %vm653_vm2, %v613_v60 }
 0x108   : > { %v592_v2 = vadd.f32 %v2566_v1, %v1884_v18  ;;  %v2570_v3 = vpop.f32.mrb[15].mxu0  ;;  %2056 = vmatmul.mubr.msk.bf16.gmra.mrb[8].mxu1 %vm653_vm2, %v614_v59  ;;  %v607_v5 = vmax.f32 %v591_v62, 0.0 }
 0x109   : > { %v590_v4 = vadd.f32 %v1884_v18, %v2570_v3  ;;  %v605_v7 = vmax.f32 %v589_v0, 0.0 }
 0x10a   : > { %v608_v6 = vmax.f32 %v592_v2, 0.0 }
 0x10b   : > { %v606_v8 = vmax.f32 %v590_v4, 0.0 }
 0x10c   : > { %v616_v9 = vpack.c.bf16 %v608_v6, %v607_v5 }
 0x10d   : > { %v615_v10 = vpack.c.bf16 %v606_v8, %v605_v7 }
 0x10f   : > { %2059 = vmatprep.mubr.msk.bf16.mxu1 %vm653_vm2, %v615_v10 }
 0x110   : > { %2060 = vmatmul.mubr.msk.bf16.gmra.mrb[12].mxu1 %vm653_vm2, %v616_v9 }
 0x1cb   : > { %v2049_v13 = vpop.f32.mrb[0].mxu1 }
 0x1cc   : > { %v721_v14 = vadd.f32 %v2049_v13, %v1885_v12  ;;  %v712_v15 = vpop.f32.mrb[1].mxu1 }
 0x1cd   : > { %v713_v16 = vadd.f32 %v1885_v12, %v712_v15  ;;  %v2050_v17 = vpop.f32.mrb[2].mxu1 }
 0x1ce   : > { %v724_v18 = vadd.f32 %v2050_v17, %v1885_v12  ;;  %v715_v20 = vpop.f32.mrb[3].mxu1  ;;  %v777_v24 = vmax.f32 %v721_v14, 0.0 }
 0x1cf   : > { %v716_v22 = vadd.f32 %v1885_v12, %v715_v20  ;;  %v775_v27 = vmax.f32 %v713_v16, 0.0 }
 0x1d0   : > { %v778_v26 = vmax.f32 %v724_v18, 0.0 }
 0x1d1   : > { %v776_v28 = vmax.f32 %v716_v22, 0.0 }
 0x1d2   : > { %v2582_v29 = vpack.i.bf16 %v778_v26, %v777_v24  ;;  %v792_v30 = vpack.c.bf16 %v778_v26, %v777_v24 }
 0x1d3   : > { %v2584_v31 = vpack.i.bf16 %v776_v28, %v775_v27  ;;  %v791_v33 = vpack.c.bf16 %v776_v28, %v775_v27  ;;  %v2053_v34 = vpop.f32.mrb[4].mxu1 }
 0x1d4   : > { %v737_v36 = vadd.f32 %v2053_v34, %v1885_v12  ;;  %v728_v38 = vpop.f32.mrb[5].mxu1 }
 0x1d5   : > { %v729_v40 = vadd.f32 %v1885_v12, %v728_v38  ;;  %v2054_v41 = vpop.f32.mrb[6].mxu1  ;;  %2071 = vmatprep.mubr.msk.bf16.mxu0 %vm653_vm2, %v791_v33 }
 0x1d6   : > { %v740_v42 = vadd.f32 %v2054_v41, %v1885_v12  ;;  %v731_v43 = vpop.f32.mrb[7].mxu1  ;;  %2072 = vmatmul.mubr.msk.bf16.vlgmr.msra.gmra.mrb[16].mxu0 %vm653_vm2, %v792_v30  ;;  %v781_v45 = vmax.f32 %v737_v36, 0.0  ;;  %v2612_v41 = vld [vmem:[%s2974_s8 + $0x2] ss:$0 sm:$0xff] }
 0x1d7   : > { %v732_v44 = vadd.f32 %v1885_v12, %v731_v43  ;;  %v779_v48 = vmax.f32 %v729_v40, 0.0  ;;  %v1092_v40 = vld [vmem:[%s2971_s5] sm:$0x3] }
 0x1d8   : > { %v782_v46 = vmax.f32 %v740_v42, 0.0  ;;  %2162 = vmatprep.subr.msk.bf16.mxu1 %vm1182_vm3, %v1092_v40 }
 0x1d9   : > { %v780_v50 = vmax.f32 %v732_v44, 0.0 }
 0x1da   : > { %v2588_v52 = vpack.i.bf16 %v782_v46, %v781_v45  ;;  %v794_v54 = vpack.c.bf16 %v782_v46, %v781_v45 }
 0x1db   : > { %v2590_v55 = vpack.i.bf16 %v780_v50, %v779_v48  ;;  %v793_v56 = vpack.c.bf16 %v780_v50, %v779_v48  ;;  %v2057_v57 = vpop.f32.mrb[8].mxu1 }
 0x1dc   : > { %v753_v58 = vadd.f32 %v2057_v57, %v1885_v12  ;;  %v744_v59 = vpop.f32.mrb[9].mxu1 }
 0x1dd   : > { %v745_v60 = vadd.f32 %v1885_v12, %v744_v59  ;;  %v2058_v62 = vpop.f32.mrb[10].mxu1  ;;  %2075 = vmatprep.mubr.msk.bf16.mxu0 %vm653_vm2, %v793_v56 }
 0x1de   : > { %v756_v0 = vadd.f32 %v2058_v62, %v1885_v12  ;;  %v747_v2 = vpop.f32.mrb[11].mxu1  ;;  %2076 = vmatmul.mubr.msk.bf16.gmra.mrb[20].mxu0 %vm653_vm2, %v794_v54  ;;  %v785_v5 = vmax.f32 %v753_v58, 0.0 }
 0x1df   : > { %v748_v4 = vadd.f32 %v1885_v12, %v747_v2  ;;  %v783_v7 = vmax.f32 %v745_v60, 0.0 }
 0x1e0   : > { %v786_v6 = vmax.f32 %v756_v0, 0.0 }
 0x1e1   : > { %v784_v8 = vmax.f32 %v748_v4, 0.0 }
 0x1e2   : > { %v2594_v9 = vpack.i.bf16 %v786_v6, %v785_v5  ;;  %v796_v10 = vpack.c.bf16 %v786_v6, %v785_v5 }
 0x1e3   : > { %v2596_v11 = vpack.i.bf16 %v784_v8, %v783_v7  ;;  %v795_v13 = vpack.c.bf16 %v784_v8, %v783_v7  ;;  %v2061_v14 = vpop.f32.mrb[12].mxu1 }
 0x1e4   : > { %v769_v15 = vadd.f32 %v2061_v14, %v1885_v12  ;;  %v760_v16 = vpop.f32.mrb[13].mxu1 }
 0x1e5   : > { %v761_v17 = vadd.f32 %v1885_v12, %v760_v16  ;;  %v2062_v18 = vpop.f32.mrb[14].mxu1  ;;  %2079 = vmatprep.mubr.msk.bf16.mxu0 %vm653_vm2, %v795_v13 }
 0x1e6   : > { %v772_v20 = vadd.f32 %v2062_v18, %v1885_v12  ;;  %v763_v22 = vpop.f32.mrb[15].mxu1  ;;  %2080 = vmatmul.mubr.msk.bf16.gmra.mrb[24].mxu0 %vm653_vm2, %v796_v10  ;;  %v789_v26 = vmax.f32 %v769_v15, 0.0 }
 0x1e7   : > { %v764_v24 = vadd.f32 %v1885_v12, %v763_v22  ;;  %v787_v28 = vmax.f32 %v761_v17, 0.0  ;;  %v1184_v12 = vsel %vm1182_vm3, %v1092_v40, 0 }
 0x1e8   : > { %v790_v27 = vmax.f32 %v772_v20, 0.0  ;;  %2088 = vmatpush3.bf16.msra.mxu1 %v1184_v12 }
 0x1e9   : > { %v788_v30 = vmax.f32 %v764_v24, 0.0 }
 0x1ea   : > { %v2600_v33 = vpack.i.bf16 %v790_v27, %v789_v26  ;;  %v798_v34 = vpack.c.bf16 %v790_v27, %v789_v26 }
 0x1eb   : > { %v2602_v36 = vpack.i.bf16 %v788_v30, %v787_v28  ;;  %v797_v38 = vpack.c.bf16 %v788_v30, %v787_v28 }
 0x1ed   : > { %2083 = vmatprep.mubr.msk.bf16.mxu0 %vm653_vm2, %v797_v38 }
 0x1ee   : > { %2084 = vmatmul.mubr.msk.bf16.gmra.mrb[28].mxu0 %vm653_vm2, %v798_v34 }
 0x2a9   : > { %v2073_v42 = vpop.f32.mrb[16].mxu0 }
 0x2aa   : > { %v2615_v43 = vadd.f32 %v2073_v42, %v2612_v41  ;;  %v893_v44 = vpop.f32.mrb[17].mxu0 }
 0x2ab   : > { %v2618_v45 = vadd.f32 %v2612_v41, %v893_v44  ;;  %v2074_v46 = vpop.f32.mrb[18].mxu0 }
 0x2ac   : > { %v960_v48 = vmul.f32 1.442695, %v2615_v43  ;;  %v2622_v50 = vadd.f32 %v2074_v46, %v2612_v41  ;;  %v896_v54 = vpop.f32.mrb[19].mxu0 }
 0x2ad   : > { %v956_v56 = vmul.f32 1.442695, %v2618_v45  ;;  %v2626_v57 = vadd.f32 %v2612_v41, %v896_v54 }
 0x2ae   : > { %2276 = vpow2.f32 %v960_v48  ;;  %v962_v58 = vmul.f32 1.442695, %v2622_v50 }
 0x2af   : > { %2278 = vpow2.f32 %v956_v56  ;;  %v958_v59 = vmul.f32 1.442695, %v2626_v57 }
 0x2b0   : > { %2280 = vpow2.f32 %v962_v58 }
 0x2b1   : > { %v2077_v60 = vpop.f32.mrb[20].mxu0  ;;  %2282 = vpow2.f32 %v958_v59 }
 0x2b2   : > { %v909_v62 = vpop.f32.mrb[21].mxu0  ;;  %v2631_v0 = vadd.f32 %v2077_v60, %v2612_v41 }
 0x2b3   : > { %v2634_v2 = vadd.f32 %v2612_v41, %v909_v62  ;;  %v2078_v4 = vpop.f32.mrb[22].mxu0 }
 0x2b4   : > { %v912_v5 = vpop.f32.mrb[23].mxu0  ;;  %v2638_v7 = vadd.f32 %v2078_v4, %v2612_v41  ;;  %v968_v10 = vmul.f32 1.442695, %v2631_v0 }
 0x2b5   : > { %v964_v6 = vmul.f32 1.442695, %v2634_v2  ;;  %v2641_v8 = vadd.f32 %v2612_v41, %v912_v5 }
 0x2b6   : > { %v970_v16 = vmul.f32 1.442695, %v2638_v7 }
 0x2b7   : > { %2284 = vpow2.f32 %v964_v6  ;;  %v966_v13 = vmul.f32 1.442695, %v2641_v8 }
 0x2b8   : > { %v2277_v14 = vpop.eup %2276 }
 0x2b9   : > { %v2279_v15 = vpop.eup %2278  ;;  %2286 = vpow2.f32 %v966_v13  ;;  %1008 = vrot.lane.b32.xlu1 %v2277_v14, %s2372_s17  ;;  %v2081_v17 = vpop.f32.mrb[24].mxu0 }
 0x2ba   : > { %v925_v18 = vpop.f32.mrb[25].mxu0  ;;  %1004 = vrot.lane.b32.xlu0 %v2279_v15, %s2372_s17  ;;  %2288 = vpow2.f32 %v968_v10  ;;  %v2649_v20 = vadd.f32 %v2081_v17, %v2612_v41  ;;  %v2281_v26 = vpop.eup %2280 }
 0x2bb   : > { %v2652_v22 = vadd.f32 %v2612_v41, %v925_v18  ;;  %v2082_v24 = vpop.f32.mrb[26].mxu0  ;;  %v2283_v28 = vpop.eup %2282  ;;  %2290 = vpow2.f32 %v970_v16 }
 0x2bc   : > { %v928_v27 = vpop.f32.mrb[27].mxu0  ;;  %v2656_v34 = vadd.f32 %v2082_v24, %v2612_v41  ;;  %v976_v40 = vmul.f32 1.442695, %v2649_v20 }
 0x2bd   : > { %v972_v30 = vmul.f32 1.442695, %v2652_v22  ;;  %v2659_v38 = vadd.f32 %v2612_v41, %v928_v27  ;;  %1010 = vrot.lane.b32.xlu1 %v2281_v26, %s2372_s17 }
 0x2be   : > { %1006 = vrot.lane.b32.xlu0 %v2283_v28, %s2372_s17  ;;  %v978_v44 = vmul.f32 1.442695, %v2656_v34 }
 0x2bf   : > { %2292 = vpow2.f32 %v972_v30  ;;  %v974_v12 = vmul.f32 1.442695, %v2659_v38 }
 0x2c1   : > { %v2285_v42 = vpop.eup %2284  ;;  %2294 = vpow2.f32 %v974_v12  ;;  %v2085_v46 = vpop.f32.mrb[28].mxu0 }
 0x2c2   : > { %1012 = vrot.lane.b32.xlu0 %v2285_v42, %s2372_s17  ;;  %v941_v48 = vpop.f32.mrb[29].mxu0  ;;  %2296 = vpow2.f32 %v976_v40  ;;  %v2668_v56 = vadd.f32 %v2085_v46, %v2612_v41 }
 0x2c3   : > { %v2287_v54 = vpop.eup %2286  ;;  %v2671_v58 = vadd.f32 %v2612_v41, %v941_v48  ;;  %v2086_v59 = vpop.f32.mrb[30].mxu0  ;;  %2298 = vpow2.f32 %v978_v44 }
 0x2c4   : > { %1014 = vrot.lane.b32.xlu1 %v2287_v54, %s2372_s17  ;;  %v944_v60 = vpop.f32.mrb[31].mxu0  ;;  %v2289_v62 = vpop.eup %2288  ;;  %v2676_v5 = vadd.f32 %v2086_v59, %v2612_v41  ;;  %v984_v13 = vmul.f32 1.442695, %v2668_v56 }
 0x2c5   : > { %v980_v4 = vmul.f32 1.442695, %v2671_v58  ;;  %v2679_v6 = vadd.f32 %v2612_v41, %v944_v60  ;;  %v2291_v10 = vpop.eup %2290 }
 0x2c6   : > { %1016 = vrot.lane.b32.xlu0 %v2289_v62, %s2372_s17  ;;  %v986_v16 = vmul.f32 1.442695, %v2676_v5 }
 0x2c7   : > { %2300 = vpow2.f32 %v980_v4  ;;  %v982_v14 = vmul.f32 1.442695, %v2679_v6 }
 0x2c8   : > { %1018 = vrot.lane.b32.xlu1 %v2291_v10, %s2372_s17 }
 0x2c9   : > { %v2293_v15 = vpop.eup %2292  ;;  %2302 = vpow2.f32 %v982_v14 }
 0x2ca   : > { %1020 = vrot.lane.b32.xlu0 %v2293_v15, %s2372_s17  ;;  %2304 = vpow2.f32 %v984_v13 }
 0x2cb   : > { %v2295_v17 = vpop.eup %2294  ;;  %2306 = vpow2.f32 %v986_v16 }
 0x2cc   : > { %1022 = vrot.lane.b32.xlu1 %v2295_v17, %s2372_s17  ;;  %v2297_v41 = vpop.eup %2296 }
 0x2cd   : > { %v2299_v18 = vpop.eup %2298 }
 0x2ce   : > { %1024 = vrot.lane.b32.xlu0 %v2297_v41, %s2372_s17 }
 0x2d0   : > { %1026 = vrot.lane.b32.xlu1 %v2299_v18, %s2372_s17 }
 0x2d1   : > { %v2301_v24 = vpop.eup %2300 }
 0x2d2   : > { %1028 = vrot.lane.b32.xlu0 %v2301_v24, %s2372_s17 }
 0x2d3   : > { %v2303_v26 = vpop.eup %2302 }
 0x2d4   : > { %1030 = vrot.lane.b32.xlu1 %v2303_v26, %s2372_s17  ;;  %v2305_v27 = vpop.eup %2304 }
 0x2d5   : > { %v2307_v28 = vpop.eup %2306 }
 0x2d6   : > { %1032 = vrot.lane.b32.xlu0 %v2305_v27, %s2372_s17 }
 0x2d8   : > { %1034 = vrot.lane.b32.xlu1 %v2307_v28, %s2372_s17  ;;  %s2755_s17 = scalar_lea.vmem %s2967_s1, %s1865_s29 }
 0x2d9   : > { %v385_v12 = vld [vmem:[%s2755_s17 + $0x30] sm:$0xff]  ;;  %v387_v48 = vld [vmem:[%s2755_s17 + $0x40] sm:$0xff]  ;;  %v388_v62 = vld [vmem:[%s2755_s17 + $0x48] sm:$0xff] }
 0x2da   : > { %1109 = vrot.lane.b32.xlu0 %v2523_v21, %s2373_s21  ;;  %v2265_v21 = vld [vmem:[%s2972_s6 + $0x8] sm:$0xff]   ;;  %v389_v14 = vld [vmem:[%s2755_s17 + $0x50] sm:$0xff]  ;;  %v390_v17 = vld [vmem:[%s2755_s17 + $0x58] sm:$0xff] }
 0x2dc   : > { %1111 = vrot.lane.b32.xlu1 %v2529_v25, %s2373_s21 }
 0x2de   : > { %1113 = vrot.lane.b32.xlu0 %v2520_v19, %s2373_s21  ;;  %v2264_v19 = vld [vmem:[%s2972_s6] sm:$0xff]  }
 0x2df   : > { %2105 = vmatprep.subr.bf16.mxu0 %v2264_v19 }
 0x2e0   : > { %1115 = vrot.lane.b32.xlu1 %v2526_v23, %s2373_s21  ;;  %2106 = vmatpush3.bf16.msra.mxu0 %v2264_v19  ;;  %v2266_v23 = vld [vmem:[%s2972_s6 + $0x10] sm:$0xff]   ;;  %v392_v19 = vld [vmem:[%s2755_s17 + $0x68] sm:$0xff] }
 0x2e1   : > { %2107 = vmatprep.subr.bf16.mxu0 %v2265_v21 }
 0x2e2   : > { %1117 = vrot.lane.b32.xlu0 %v2535_v35, %s2373_s21 }
 0x2e4   : > { %1119 = vrot.lane.b32.xlu1 %v2542_v39, %s2373_s21  ;;  %2108 = vmatpush3.bf16.msra.mxu0 %v2265_v21  ;;  %v382_v39 = vld [vmem:[%s2755_s17 + $0x18] sm:$0xff] }
 0x2e5   : > { %2109 = vmatprep.subr.bf16.mxu0 %v2266_v23 }
 0x2e6   : > { %1121 = vrot.lane.b32.xlu0 %v2532_v32, %s2373_s21  ;;  %v379_v32 = vld [vmem:[%s2755_s17] sm:$0xff] }
 0x2e8   : > { %1123 = vrot.lane.b32.xlu1 %v2538_v37, %s2373_s21  ;;  %2110 = vmatpush3.bf16.msra.mxu0 %v2266_v23  ;;  %v381_v37 = vld [vmem:[%s2755_s17 + $0x10] sm:$0xff] }
 0x2ea   : > { %1125 = vrot.lane.b32.xlu0 %v2549_v49, %s2373_s21 }
 0x2ec   : > { %1127 = vrot.lane.b32.xlu1 %v2556_v53, %s2373_s21 }
 0x2ee   : > { %1129 = vrot.lane.b32.xlu0 %v2546_v47, %s2373_s21  ;;  %v380_v47 = vld [vmem:[%s2755_s17 + $0x8] sm:$0xff] }
 0x2f0   : > { %1131 = vrot.lane.b32.xlu1 %v2552_v51, %s2373_s21 }
 0x2f2   : > { %1133 = vrot.lane.b32.xlu0 %v2563_v63, %s2373_s21 }
 0x2f4   : > { %1135 = vrot.lane.b32.xlu1 %v2570_v3, %s2373_s21 }
 0x2f6   : > { %1137 = vrot.lane.b32.xlu0 %v2560_v61, %s2373_s21 }
 0x2f8   : > { %1139 = vrot.lane.b32.xlu1 %v2566_v1, %s2373_s21 }
 0x2fa   : > { %2207 = vrot.lane.b32.xlu0 %v2584_v31, %s2373_s21 }
 0x2fc   : > { %2212 = vrot.lane.b32.xlu1 %v2582_v29, %s2373_s21  ;;  %v383_v29 = vld [vmem:[%s2755_s17 + $0x20] sm:$0xff] }
 0x2fe   : > { %2217 = vrot.lane.b32.xlu0 %v2590_v55, %s2373_s21 }
 0x300   : > { %2222 = vrot.lane.b32.xlu1 %v2588_v52, %s2373_s21 }
 0x302   : > { %2227 = vrot.lane.b32.xlu0 %v2596_v11, %s2373_s21  ;;  %v384_v11 = vld [vmem:[%s2755_s17 + $0x28] sm:$0xff] }
 0x304   : > { %2232 = vrot.lane.b32.xlu1 %v2594_v9, %s2373_s21 }
 0x306   : > { %2237 = vrot.lane.b32.xlu0 %v2602_v36, %s2373_s21 }
 0x308   : > { %2242 = vrot.lane.b32.xlu1 %v2600_v33, %s2373_s21 }
 0x32b   : > { %v1009_v25 = vpop.permute.xlu1 %1008 }
 0x32c   : > { %v1005_v35 = vpop.permute.xlu0 %1004  ;;  %v1054_v53 = vmul.f32 %v1009_v25, %v381_v37 }
 0x32d   : > { %v1052_v49 = vmul.f32 %v1005_v35, %v379_v32  ;;  %v393_v32 = vld [vmem:[%s2755_s17 + $0x70] sm:$0xff] }
 0x32e   : > { %v1070_v55 = vadd.f32 %v1054_v53, %v2615_v43 }
 0x32f   : > { %v1011_v51 = vpop.permute.xlu1 %1010  ;;  %v1068_v31 = vadd.f32 %v1052_v49, %v2618_v45  ;;  %v386_v45 = vld [vmem:[%s2755_s17 + $0x38] sm:$0xff] }
 0x330   : > { %v1055_v61 = vmul.f32 %v1011_v51, %v382_v39  ;;  %v1007_v63 = vpop.permute.xlu0 %1006  ;;  %v394_v39 = vld [vmem:[%s2755_s17 + $0x78] sm:$0xff] }
 0x331   : > { %v1053_v1 = vmul.f32 %v1007_v63, %v380_v47 }
 0x332   : > { %v1071_v3 = vadd.f32 %v1055_v61, %v2622_v50 }
 0x333   : > { %v1069_v52 = vadd.f32 %v1053_v1, %v2626_v57 }
 0x334   : > { %v1013_v9 = vpop.permute.xlu0 %1012  ;;  %v1085_v30 = vpack.c.bf16 %v1071_v3, %v1070_v55  ;;  %v2271_v3 = vld [vmem:[%s2973_s7 + $0x18] sm:$0xff]  }
 0x335   : > { %v1084_v33 = vpack.c.bf16 %v1069_v52, %v1068_v31  ;;  %v1056_v36 = vmul.f32 %v1013_v9, %v383_v29  ;;  %v2272_v29 = vld [vmem:[%s2973_s7 + $0x20] sm:$0xff]  }
 0x336   : > { %v1015_v40 = vpop.permute.xlu1 %1014 }
 0x337   : > { %v1057_v42 = vmul.f32 %v1015_v40, %v384_v11  ;;  %2089 = vmatprep.mubr.msk.bf16.mxu1 %vm1157_vm4, %v1084_v33  ;;  %v1072_v43 = vadd.f32 %v1056_v36, %v2634_v2  ;;  %v2818_v36 = vld [vmem:[%s2974_s8 + $0x3] ss:$0 sm:$0xff] }
 0x338   : > { %v1017_v50 = vpop.permute.xlu0 %1016  ;;  %2090 = vmatmul.mubr.msk.bf16.vlgmr.msra.gmra.mrb[16].mxu1 %vm1157_vm4, %v1085_v30 }
 0x339   : > { %v1073_v57 = vadd.f32 %v1057_v42, %v2641_v8  ;;  %v1058_v44 = vmul.f32 %v1017_v50, %v385_v12 }
 0x33a   : > { %v1019_v46 = vpop.permute.xlu1 %1018 }
 0x33b   : > { %v1086_v54 = vpack.c.bf16 %v1073_v57, %v1072_v43  ;;  %v1059_v59 = vmul.f32 %v1019_v46, %v386_v45  ;;  %v1074_v4 = vadd.f32 %v1058_v44, %v2631_v0 }
 0x33c   : > { %v1021_v60 = vpop.permute.xlu0 %1020 }
 0x33d   : > { %v1075_v10 = vadd.f32 %v1059_v59, %v2638_v7  ;;  %v1060_v13 = vmul.f32 %v1021_v60, %v387_v48  ;;  %2093 = vmatprep.mubr.msk.bf16.mxu1 %vm1157_vm4, %v1086_v54  ;;  %v391_v7 = vld [vmem:[%s2755_s17 + $0x60] sm:$0xff]  ;;  %s1861_s17 = sshll.u32 %s340_s16, 7 }
 0x33e   : > { %v1023_v2 = vpop.permute.xlu1 %1022  ;;  %s2896_s22 = scalar_lea.vmem [#allocation2], %s1861_s17  ;;  %s2312_s17 = sshll.u32 %s2374_s14, 4  ;;  %s2313_s17 = int_to_ptr.vmem [resolvable:$false] %s2312_s17 }
 0x33f   : > { %v1087_v8 = vpack.c.bf16 %v1075_v10, %v1074_v4  ;;  %v1061_v15 = vmul.f32 %v1023_v2, %v388_v62  ;;  %v1076_v41 = vadd.f32 %v1060_v13, %v2652_v22  ;;  %s1783_s24 = sshll.u32 %s2896_s22, 4  ;;  %s2314_s25 = scalar_lea.vmem %s2313_s17, 4096  ;;  %s2918_s24 = int_to_ptr.vmem [resolvable:$true] %s1783_s24 }
 0x340   : > { %v1025_v16 = vpop.permute.xlu0 %1024  ;;  %s2308_s29 = scalar_lea.vmem %s2918_s24, 2048  ;;  %p2315_p0 = scmp.lt.s32.totalorder %s2918_s24, %s2313_s17 }
 0x341   : > { %v1077_v18 = vadd.f32 %v1061_v15, %v2659_v38  ;;  %v1062_v24 = vmul.f32 %v1025_v16, %v389_v14  ;;  %2094 = vmatmul.mubr.msk.bf16.gmra.mrb[20].mxu1 %vm1157_vm4, %v1087_v8  ;;  %p2309_p11 = scmp.ne.s32.totalorder %s2918_s24, %s2308_s29  ;;  %p2316_p1 = scmp.lt.s32.totalorder %s2314_s25, %s2308_s29 }
 0x342   : > { %v1027_v0 = vpop.permute.xlu1 %1026 }
 0x343   : > { %v1088_v26 = vpack.c.bf16 %v1077_v18, %v1076_v41  ;;  %v1063_v27 = vmul.f32 %v1027_v0, %v390_v17  ;;  %v1078_v21 = vadd.f32 %v1062_v24, %v2649_v20  ;;  %p2310_p12 = pnand %p2309_p11, %p2465_p5  ;;  %p2317_p2 = por %p2316_p1, %p2315_p0 }
 0x344   : > { %v1029_v28 = vpop.permute.xlu0 %1028 }
 0x345   : > { %v1079_v23 = vadd.f32 %v1063_v27, %v2656_v34  ;;  %v1064_v25 = vmul.f32 %v1029_v28, %v391_v7  ;;  %2097 = vmatprep.mubr.msk.bf16.mxu1 %vm1157_vm4, %v1088_v26  ;;  %p2311_p13 = pneg %p2310_p12 }
 0x346   : > { %v1031_v22 = vpop.permute.xlu1 %1030 }
 0x347   : > { %v1089_v38 = vpack.c.bf16 %v1079_v23, %v1078_v21  ;;  %v1065_v35 = vmul.f32 %v1031_v22, %v392_v19  ;;  %v1080_v47 = vadd.f32 %v1064_v25, %v2671_v58  ;;  %v2267_v58 = vld [vmem:[%s2972_s6 + $0x18] sm:$0xff]   ;;  %p2318_p3 = pnand %p2317_p2, %p2311_p13 }
 0x348   : > { %v1033_v37 = vpop.permute.xlu0 %1032  ;;  %2111 = vmatprep.subr.bf16.mxu0 %v2267_v58 }
 0x349   : > { %v1081_v49 = vadd.f32 %v1065_v35, %v2679_v6  ;;  %v1066_v51 = vmul.f32 %v1033_v37, %v393_v32  ;;  %2098 = vmatmul.mubr.msk.bf16.gmra.mrb[24].mxu1 %vm1157_vm4, %v1089_v38  ;;  %2112 = vmatpush3.bf16.msra.mxu0 %v2267_v58  ;;  %v2268_v6 = vld [vmem:[%s2973_s7] sm:$0xff]  }
 0x34a   : > { %v1035_v53 = vpop.permute.xlu1 %1034  ;;  %2129 = vmatprep.subr.bf16.mxu1 %v2268_v6 }
 0x34b   : > { %v1090_v20 = vpack.c.bf16 %v1081_v49, %v1080_v47  ;;  %v1067_v61 = vmul.f32 %v1035_v53, %v394_v39  ;;  %v1082_v34 = vadd.f32 %v1066_v51, %v2668_v56  ;;  %v2269_v56 = vld [vmem:[%s2973_s7 + $0x8] sm:$0xff]   ;;  %2130 = vmatpush3.bf16.msra.mxu1 %v2268_v6 }
 0x34c   : > { %2131 = vmatprep.subr.bf16.mxu1 %v2269_v56  ;;  %v1110_v31 = vpop.permute.xlu0 %1109 }
 0x34d   : > { %v1083_v63 = vadd.f32 %v1067_v61, %v2676_v5  ;;  %2101 = vmatprep.mubr.msk.bf16.mxu1 %vm1157_vm4, %v1090_v20  ;;  %v2270_v5 = vld [vmem:[%s2973_s7 + $0x10] sm:$0xff]  }
 0x34e   : > { %v1112_v52 = vpop.permute.xlu1 %1111 }
 0x34f   : > { %v1091_v1 = vpack.c.bf16 %v1083_v63, %v1082_v34  ;;  %2132 = vmatpush3.bf16.msra.mxu1 %v2269_v56 }
 0x350   : > { %2133 = vmatprep.subr.bf16.mxu1 %v2270_v5  ;;  %v1114_v55 = vpop.permute.xlu0 %1113 }
 0x351   : > { %2102 = vmatmul.mubr.msk.bf16.gmra.mrb[28].mxu1 %vm1157_vm4, %v1091_v1 }
 0x352   : > { %v1116_v9 = vpop.permute.xlu1 %1115 }
 0x353   : > { %2134 = vmatpush3.bf16.msra.mxu1 %v2270_v5 }
 0x354   : > { %2135 = vmatprep.subr.bf16.mxu1 %v2271_v3  ;;  %v1118_v11 = vpop.permute.xlu0 %1117 }
 0x356   : > { %v1120_v33 = vpop.permute.xlu1 %1119 }
 0x357   : > { %2136 = vmatpush3.bf16.msra.mxu1 %v2271_v3 }
 0x358   : > { %2137 = vmatprep.subr.bf16.mxu1 %v2272_v29  ;;  %v1122_v40 = vpop.permute.xlu0 %1121 }
 0x35a   : > { %v1124_v43 = vpop.permute.xlu1 %1123 }
 0x35b   : > { %2138 = vmatpush3.bf16.msra.mxu1 %v2272_v29 }
 0x35c   : > { %v1126_v62 = vpop.permute.xlu0 %1125 }
 0x35e   : > { %v1128_v14 = vpop.permute.xlu1 %1127 }
 0x360   : > { %v1130_v27 = vpop.permute.xlu0 %1129 }
 0x362   : > { %v1132_v23 = vpop.permute.xlu1 %1131 }
 0x364   : > { %v1134_v51 = vpop.permute.xlu0 %1133 }
 0x366   : > { %v1136_v58 = vpop.permute.xlu1 %1135 }
 0x40b   : > { %v2091_v30 = vpop.f32.mrb[16].mxu1 }
 0x40c   : > { %v1229_v12 = vadd.f32 %v2091_v30, %v1114_v55  ;;  %v1220_v42 = vpop.f32.mrb[17].mxu1 }
 0x40d   : > { %v1221_v50 = vadd.f32 %v1220_v42, %v1110_v31  ;;  %v2092_v45 = vpop.f32.mrb[18].mxu1 }
 0x40e   : > { %v1289_v57 = vadd.f32 %v2818_v36, %v1229_v12  ;;  %v1232_v44 = vadd.f32 %v2092_v45, %v1116_v9  ;;  %v1223_v46 = vpop.f32.mrb[19].mxu1  ;;  %v1140_v12 = vpop.permute.xlu1 %1139 }
 0x40f   : > { %v1287_v48 = vadd.f32 %v2818_v36, %v1221_v50  ;;  %v1224_v54 = vadd.f32 %v1223_v46, %v1112_v52  ;;  %v1138_v52 = vpop.permute.xlu0 %1137 }
 0x410   : > { %v1290_v59 = vadd.f32 %v2818_v36, %v1232_v44  ;;  %v1305_v4 = vmax.f32 %v1289_v57, 0.0 }
 0x411   : > { %v1288_v60 = vadd.f32 %v2818_v36, %v1224_v54  ;;  %v1303_v13 = vmax.f32 %v1287_v48, 0.0 }
 0x412   : > { %v1306_v10 = vmax.f32 %v1290_v59, 0.0 }
 0x413   : > { %v1304_v2 = vmax.f32 %v1288_v60, 0.0 }
 0x414   : > { %v1320_v8 = vpack.c.bf16 %v1306_v10, %v1305_v4  ;;  %v2095_v15 = vpop.f32.mrb[20].mxu1 }
 0x415   : > { %v1319_v16 = vpack.c.bf16 %v1304_v2, %v1303_v13  ;;  %v1245_v17 = vadd.f32 %v2095_v15, %v1122_v40  ;;  %v1236_v41 = vpop.f32.mrb[21].mxu1  ;;  %v2856_v15 = vld [vmem:[%s2974_s8 + $0x4] ss:$0 sm:$0xff] }
 0x416   : > { %v1237_v18 = vadd.f32 %v1236_v41, %v1118_v11  ;;  %v2096_v24 = vpop.f32.mrb[22].mxu1 }
 0x417   : > { %v1293_v0 = vadd.f32 %v2818_v36, %v1245_v17  ;;  %v1248_v7 = vadd.f32 %v2096_v24, %v1124_v43  ;;  %v1239_v26 = vpop.f32.mrb[23].mxu1  ;;  %2113 = vmatprep.mubr.msk.bf16.mxu0 %vm653_vm2, %v1319_v16 }
 0x418   : > { %v1291_v28 = vadd.f32 %v2818_v36, %v1237_v18  ;;  %v1240_v19 = vadd.f32 %v1239_v26, %v1120_v33  ;;  %2114 = vmatmul.mubr.msk.bf16.vlgmr.msra.gmra.mrb[32].mxu0 %vm653_vm2, %v1320_v8  ;;  %v2275_v8 = vld [vmem:[%s2973_s7 + $0x38] sm:$0xff]   ;;  %v2213_v18 = vpop.permute.xlu1 %2212 }
 0x419   : > { %v1294_v21 = vadd.f32 %v2818_v36, %v1248_v7  ;;  %v1309_v22 = vmax.f32 %v1293_v0, 0.0  ;;  %v2208_v7 = vpop.permute.xlu0 %2207 }
 0x41a   : > { %v1292_v25 = vadd.f32 %v2818_v36, %v1240_v19  ;;  %v1307_v38 = vmax.f32 %v1291_v28, 0.0 }
 0x41b   : > { %v1310_v32 = vmax.f32 %v1294_v21, 0.0 }
 0x41c   : > { %v1308_v35 = vmax.f32 %v1292_v25, 0.0  ;;  %v2099_v37 = vpop.f32.mrb[24].mxu1  ;;  %v2214_v25 = vunpack.i.l.bf16 %v2213_v18 }
 0x41d   : > { %v1322_v39 = vpack.c.bf16 %v1310_v32, %v1309_v22  ;;  %v1261_v47 = vadd.f32 %v2099_v37, %v1130_v27  ;;  %v1252_v49 = vpop.f32.mrb[25].mxu1  ;;  %v2210_v32 = vunpack.i.h.bf16 %v2208_v7 }
 0x41e   : > { %v1321_v53 = vpack.c.bf16 %v1308_v35, %v1307_v38  ;;  %v1253_v20 = vadd.f32 %v1252_v49, %v1126_v62  ;;  %v2100_v61 = vpop.f32.mrb[26].mxu1  ;;  %v2209_v38 = vunpack.i.l.bf16 %v2208_v7 }
 0x41f   : > { %v1297_v34 = vadd.f32 %v2818_v36, %v1261_v47  ;;  %v1264_v63 = vadd.f32 %v2100_v61, %v1132_v23  ;;  %v1255_v1 = vpop.f32.mrb[27].mxu1  ;;  %v2215_v23 = vunpack.i.h.bf16 %v2213_v18 }
 0x420   : > { %v1295_v6 = vadd.f32 %v2818_v36, %v1253_v20  ;;  %v1256_v56 = vadd.f32 %v1255_v1, %v1128_v14  ;;  %2117 = vmatprep.mubr.msk.bf16.mxu0 %vm653_vm2, %v1321_v53  ;;  %v2273_v14 = vld [vmem:[%s2973_s7 + $0x28] sm:$0xff]  }
 0x421   : > { %v1298_v5 = vadd.f32 %v2818_v36, %v1264_v63  ;;  %2118 = vmatmul.mubr.msk.bf16.gmra.mrb[36].mxu0 %vm653_vm2, %v1322_v39  ;;  %v1313_v29 = vmax.f32 %v1297_v34, 0.0  ;;  %2139 = vmatprep.subr.bf16.mxu1 %v2273_v14  ;;  %v2223_v63 = vpop.permute.xlu1 %2222 }
 0x422   : > { %v1296_v3 = vadd.f32 %v2818_v36, %v1256_v56  ;;  %v1311_v55 = vmax.f32 %v1295_v6, 0.0  ;;  %2140 = vmatpush3.bf16.msra.mxu1 %v2273_v14  ;;  %v2218_v6 = vpop.permute.xlu0 %2217 }
 0x423   : > { %v1314_v31 = vmax.f32 %v1298_v5, 0.0 }
 0x424   : > { %v1312_v9 = vmax.f32 %v1296_v3, 0.0  ;;  %v2103_v11 = vpop.f32.mrb[28].mxu1 }
 0x425   : > { %v1324_v33 = vpack.c.bf16 %v1314_v31, %v1313_v29  ;;  %v1277_v30 = vadd.f32 %v2103_v11, %v1138_v52  ;;  %v1268_v40 = vpop.f32.mrb[29].mxu1  ;;  %v2225_v52 = vunpack.i.h.bf16 %v2223_v63  ;;  %v2220_v11 = vunpack.i.h.bf16 %v2218_v6 }
 0x426   : > { %v1323_v42 = vpack.c.bf16 %v1312_v9, %v1311_v55  ;;  %v1269_v50 = vadd.f32 %v1268_v40, %v1134_v51  ;;  %v2104_v45 = vpop.f32.mrb[30].mxu1  ;;  %v2224_v55 = vunpack.i.l.bf16 %v2223_v63 }
 0x427   : > { %v1301_v43 = vadd.f32 %v2818_v36, %v1277_v30  ;;  %v1280_v57 = vadd.f32 %v2104_v45, %v1140_v12  ;;  %v1271_v44 = vpop.f32.mrb[31].mxu1 }
 0x428   : > { %v1299_v46 = vadd.f32 %v2818_v36, %v1269_v50  ;;  %v1272_v48 = vadd.f32 %v1271_v44, %v1136_v58  ;;  %2121 = vmatprep.mubr.msk.bf16.mxu0 %vm653_vm2, %v1323_v42 }
 0x429   : > { %v1302_v54 = vadd.f32 %v2818_v36, %v1280_v57  ;;  %2122 = vmatmul.mubr.msk.bf16.gmra.mrb[40].mxu0 %vm653_vm2, %v1324_v33  ;;  %v1317_v60 = vmax.f32 %v1301_v43, 0.0  ;;  %v2219_v33 = vunpack.i.l.bf16 %v2218_v6 }
 0x42a   : > { %v1300_v59 = vadd.f32 %v2818_v36, %v1272_v48  ;;  %v1315_v4 = vmax.f32 %v1299_v46, 0.0  ;;  %v2274_v36 = vld [vmem:[%s2973_s7 + $0x30] sm:$0xff]   ;;  %v2233_v48 = vpop.permute.xlu1 %2232 }
 0x42b   : > { %v1318_v62 = vmax.f32 %v1302_v54, 0.0  ;;  %2141 = vmatprep.subr.bf16.mxu1 %v2274_v36  ;;  %v2235_v14 = vunpack.i.h.bf16 %v2233_v48 }
 0x42c   : > { %v1316_v10 = vmax.f32 %v1300_v59, 0.0  ;;  %2142 = vmatpush3.bf16.msra.mxu1 %v2274_v36  ;;  %v2234_v36 = vunpack.i.l.bf16 %v2233_v48 }
 0x42d   : > { %v1326_v13 = vpack.c.bf16 %v1318_v62, %v1317_v60  ;;  %2143 = vmatprep.subr.bf16.mxu1 %v2275_v8  ;;  %v2228_v60 = vpop.permute.xlu0 %2227 }
 0x42e   : > { %v1325_v2 = vpack.c.bf16 %v1316_v10, %v1315_v4 }
 0x430   : > { %2125 = vmatprep.mubr.msk.bf16.mxu0 %vm653_vm2, %v1325_v2  ;;  %2144 = vmatpush3.bf16.msra.mxu1 %v2275_v8 }
 0x431   : > { %2126 = vmatmul.mubr.msk.bf16.gmra.mrb[44].mxu0 %vm653_vm2, %v1326_v13 }
 0x4eb   : > { %v2115_v16 = vpop.f32.mrb[32].mxu0 }
 0x4ec   : > { %v1430_v17 = vadd.f32 %v2115_v16, %v2856_v15  ;;  %v1421_v41 = vpop.f32.mrb[33].mxu0  ;;  %v2230_v16 = vunpack.i.h.bf16 %v2228_v60 }
 0x4ed   : > { %v1422_v24 = vadd.f32 %v2856_v15, %v1421_v41  ;;  %v2116_v0 = vpop.f32.mrb[34].mxu0 }
 0x4ee   : > { %v1486_v26 = vmax.f32 %v1430_v17, 0.0  ;;  %v1433_v27 = vadd.f32 %v2116_v0, %v2856_v15  ;;  %v1424_v28 = vpop.f32.mrb[35].mxu0  ;;  %v2229_v17 = vunpack.i.l.bf16 %v2228_v60 }
 0x4ef   : > { %v1484_v19 = vmax.f32 %v1422_v24, 0.0  ;;  %v1425_v21 = vadd.f32 %v2856_v15, %v1424_v28 }
 0x4f0   : > { %v1487_v22 = vmax.f32 %v1433_v27, 0.0  ;;  %v1566_v37 = vsel %vm653_vm2, %v1486_v26, %v2214_v25 }
 0x4f1   : > { %v1485_v35 = vmax.f32 %v1425_v21, 0.0  ;;  %v1564_v49 = vsel %vm653_vm2, %v1484_v19, %v2209_v38 }
 0x4f2   : > { %v1567_v39 = vsel %vm653_vm2, %v1487_v22, %v2215_v23  ;;  %v2243_v23 = vpop.permute.xlu1 %2242 }
 0x4f3   : > { %v1581_v47 = vpack.c.bf16 %v1567_v39, %v1566_v37  ;;  %v1565_v51 = vsel %vm653_vm2, %v1485_v35, %v2210_v32  ;;  %v2238_v32 = vpop.permute.xlu0 %2237 }
 0x4f4   : > { %v2119_v53 = vpop.f32.mrb[36].mxu0  ;;  %v1580_v20 = vpack.c.bf16 %v1565_v51, %v1564_v49  ;;  %v2245_v49 = vunpack.i.h.bf16 %v2243_v23  ;;  %v2244_v51 = vunpack.i.l.bf16 %v2243_v23 }
 0x4f5   : > { %v1446_v61 = vadd.f32 %v2119_v53, %v2856_v15  ;;  %v1437_v34 = vpop.f32.mrb[37].mxu0 }
 0x4f6   : > { %v1438_v1 = vadd.f32 %v2856_v15, %v1437_v34  ;;  %v2120_v58 = vpop.f32.mrb[38].mxu0  ;;  %2145 = vmatprep.mubr.bf16.mxu1 %v1580_v20  ;;  %v2240_v20 = vunpack.i.h.bf16 %v2238_v32 }
 0x4f7   : > { %v1490_v56 = vmax.f32 %v1446_v61, 0.0  ;;  %v1449_v5 = vadd.f32 %v2120_v58, %v2856_v15  ;;  %v1440_v3 = vpop.f32.mrb[39].mxu0  ;;  %2146 = vmatmul.mubr.bf16.vlgmr.msra.gmra.mrb[32].mxu1 %v1581_v47  ;;  %v2239_v61 = vunpack.i.l.bf16 %v2238_v32 }
 0x4f8   : > { %v1488_v29 = vmax.f32 %v1438_v1, 0.0  ;;  %v1441_v31 = vadd.f32 %v2856_v15, %v1440_v3 }
 0x4f9   : > { %v1491_v9 = vmax.f32 %v1449_v5, 0.0  ;;  %v1570_v40 = vsel %vm653_vm2, %v1490_v56, %v2224_v55 }
 0x4fa   : > { %v1489_v30 = vmax.f32 %v1441_v31, 0.0  ;;  %v1568_v50 = vsel %vm653_vm2, %v1488_v29, %v2219_v33 }
 0x4fb   : > { %v1571_v12 = vsel %vm653_vm2, %v1491_v9, %v2225_v52 }
 0x4fc   : > { %v2123_v42 = vpop.f32.mrb[40].mxu0  ;;  %v1569_v45 = vsel %vm653_vm2, %v1489_v30, %v2220_v11  ;;  %v1583_v43 = vpack.c.bf16 %v1571_v12, %v1570_v40 }
 0x4fd   : > { %v1462_v57 = vadd.f32 %v2123_v42, %v2856_v15  ;;  %v1453_v44 = vpop.f32.mrb[41].mxu0  ;;  %v1582_v46 = vpack.c.bf16 %v1569_v45, %v1568_v50 }
 0x4fe   : > { %v1454_v54 = vadd.f32 %v2856_v15, %v1453_v44  ;;  %v2124_v59 = vpop.f32.mrb[42].mxu0 }
 0x4ff   : > { %v1494_v62 = vmax.f32 %v1462_v57, 0.0  ;;  %v1465_v4 = vadd.f32 %v2124_v59, %v2856_v15  ;;  %v1456_v10 = vpop.f32.mrb[43].mxu0  ;;  %2149 = vmatprep.mubr.bf16.mxu1 %v1582_v46 }
 0x500   : > { %v1492_v13 = vmax.f32 %v1454_v54, 0.0  ;;  %v1457_v2 = vadd.f32 %v2856_v15, %v1456_v10  ;;  %2150 = vmatmul.mubr.bf16.gmra.mrb[36].mxu1 %v1583_v43 }
 0x501   : > { %v1495_v8 = vmax.f32 %v1465_v4, 0.0  ;;  %v1574_v18 = vsel %vm653_vm2, %v1494_v62, %v2234_v36 }
 0x502   : > { %v1493_v41 = vmax.f32 %v1457_v2, 0.0  ;;  %v1572_v7 = vsel %vm653_vm2, %v1492_v13, %v2229_v17 }
 0x503   : > { %v1575_v24 = vsel %vm653_vm2, %v1495_v8, %v2235_v14 }
 0x504   : > { %v2127_v0 = vpop.f32.mrb[44].mxu0  ;;  %v1573_v26 = vsel %vm653_vm2, %v1493_v41, %v2230_v16  ;;  %v1585_v27 = vpack.c.bf16 %v1575_v24, %v1574_v18 }
 0x505   : > { %v1478_v28 = vadd.f32 %v2127_v0, %v2856_v15  ;;  %v1469_v19 = vpop.f32.mrb[45].mxu0  ;;  %v1584_v21 = vpack.c.bf16 %v1573_v26, %v1572_v7 }
 0x506   : > { %v1470_v25 = vadd.f32 %v2856_v15, %v1469_v19  ;;  %v2128_v22 = vpop.f32.mrb[46].mxu0 }
 0x507   : > { %v1498_v38 = vmax.f32 %v1478_v28, 0.0  ;;  %v1481_v35 = vadd.f32 %v2128_v22, %v2856_v15  ;;  %v1472_v37 = vpop.f32.mrb[47].mxu0  ;;  %2153 = vmatprep.mubr.bf16.mxu1 %v1584_v21 }
 0x508   : > { %v1496_v39 = vmax.f32 %v1470_v25, 0.0  ;;  %v1473_v47 = vadd.f32 %v2856_v15, %v1472_v37  ;;  %2154 = vmatmul.mubr.bf16.gmra.mrb[40].mxu1 %v1585_v27  ;;  %v1933_v15 = vld [vmem:[%s2974_s8 + $0x5] ss:$0 sm:$0xff] }
 0x509   : > { %v1499_v53 = vmax.f32 %v1481_v35, 0.0  ;;  %v1578_v63 = vsel %vm653_vm2, %v1498_v38, %v2244_v51 }
 0x50a   : > { %v1497_v34 = vmax.f32 %v1473_v47, 0.0  ;;  %v1576_v58 = vsel %vm653_vm2, %v1496_v39, %v2239_v61 }
 0x50b   : > { %v1579_v1 = vsel %vm653_vm2, %v1499_v53, %v2245_v49 }
 0x50c   : > { %v1577_v6 = vsel %vm653_vm2, %v1497_v34, %v2240_v20  ;;  %v1587_v56 = vpack.c.bf16 %v1579_v1, %v1578_v63 }
 0x50d   : > { %v1586_v5 = vpack.c.bf16 %v1577_v6, %v1576_v58 }
 0x50f   : > { %2157 = vmatprep.mubr.bf16.mxu1 %v1586_v5 }
 0x510   : > { %2158 = vmatmul.mubr.bf16.gmra.mrb[44].mxu1 %v1587_v56 }
 0x5ca   : > { %v2147_v3 = vpop.f32.mrb[32].mxu1 }
 0x5cb   : > { %v1699_v29 = vadd.f32 %v2147_v3, %v1933_v15  ;;  %v1690_v31 = vpop.f32.mrb[33].mxu1 }
 0x5cc   : > { %v1691_v52 = vadd.f32 %v1933_v15, %v1690_v31  ;;  %v2148_v55 = vpop.f32.mrb[34].mxu1 }
 0x5cd   : > { %1755 = vst [vmem:[%s2896_s22 + $0x10] sm:$0xff] %v1699_v29  ;;  %v1702_v9 = vadd.f32 %v2148_v55, %v1933_v15  ;;  %v1693_v11 = vpop.f32.mrb[35].mxu1 }
 0x5ce   : > { %1753 = vst [vmem:[%s2896_s22] sm:$0xff] %v1691_v52  ;;  %v1694_v33 = vadd.f32 %v1933_v15, %v1693_v11 }
 0x5cf   : > { %1756 = vst [vmem:[%s2896_s22 + $0x18] sm:$0xff] %v1702_v9 }
 0x5d0   : > { %1754 = vst [vmem:[%s2896_s22 + $0x8] sm:$0xff] %v1694_v33 }
 0x5d3   : > { %v2151_v30 = vpop.f32.mrb[36].mxu1 }
 0x5d4   : > { %v1715_v40 = vadd.f32 %v2151_v30, %v1933_v15  ;;  %v1706_v12 = vpop.f32.mrb[37].mxu1 }
 0x5d5   : > { %v1707_v42 = vadd.f32 %v1933_v15, %v1706_v12  ;;  %v2152_v50 = vpop.f32.mrb[38].mxu1 }
 0x5d6   : > { %1759 = vst [vmem:[%s2896_s22 + $0x30] sm:$0xff] %v1715_v40  ;;  %v1718_v45 = vadd.f32 %v2152_v50, %v1933_v15  ;;  %v1709_v43 = vpop.f32.mrb[39].mxu1 }
 0x5d7   : > { %1757 = vst [vmem:[%s2896_s22 + $0x20] sm:$0xff] %v1707_v42  ;;  %v1710_v57 = vadd.f32 %v1933_v15, %v1709_v43 }
 0x5d8   : > { %1760 = vst [vmem:[%s2896_s22 + $0x38] sm:$0xff] %v1718_v45 }
 0x5d9   : > { %1758 = vst [vmem:[%s2896_s22 + $0x28] sm:$0xff] %v1710_v57 }
 0x5db   : > { %v2155_v44 = vpop.f32.mrb[40].mxu1 }
 0x5dc   : > { %v1731_v46 = vadd.f32 %v2155_v44, %v1933_v15  ;;  %v1722_v48 = vpop.f32.mrb[41].mxu1 }
 0x5dd   : > { %v1723_v54 = vadd.f32 %v1933_v15, %v1722_v48  ;;  %v2156_v59 = vpop.f32.mrb[42].mxu1 }
 0x5de   : > { %1763 = vst [vmem:[%s2896_s22 + $0x50] sm:$0xff] %v1731_v46  ;;  %v1734_v60 = vadd.f32 %v2156_v59, %v1933_v15  ;;  %v1725_v62 = vpop.f32.mrb[43].mxu1 }
 0x5df   : > { %1761 = vst [vmem:[%s2896_s22 + $0x40] sm:$0xff] %v1723_v54  ;;  %v1726_v4 = vadd.f32 %v1933_v15, %v1725_v62 }
 0x5e0   : > { %1764 = vst [vmem:[%s2896_s22 + $0x58] sm:$0xff] %v1734_v60 }
 0x5e1   : > { %1762 = vst [vmem:[%s2896_s22 + $0x48] sm:$0xff] %v1726_v4 }
 0x5e3   : > { %v2159_v10 = vpop.f32.mrb[44].mxu1 }
 0x5e4   : > { %v1747_v13 = vadd.f32 %v2159_v10, %v1933_v15  ;;  %v1738_v2 = vpop.f32.mrb[45].mxu1 }
 0x5e5   : > { %v1739_v14 = vadd.f32 %v1933_v15, %v1738_v2  ;;  %v2160_v36 = vpop.f32.mrb[46].mxu1 }
 0x5e6   : > { %1767 = vst [vmem:[%s2896_s22 + $0x70] sm:$0xff] %v1747_v13  ;;  %v1750_v8 = vadd.f32 %v2160_v36, %v1933_v15  ;;  %v1741_v16 = vpop.f32.mrb[47].mxu1 }
 0x5e7   : > { %1765 = vst [vmem:[%s2896_s22 + $0x60] sm:$0xff] %v1739_v14  ;;  %v1742_v17 = vadd.f32 %v1933_v15, %v1741_v16 }
 0x5e8   : > { %1768 = vst [vmem:[%s2896_s22 + $0x78] sm:$0xff] %v1750_v8 }
 0x5e9   : > { %1766 = vst [vmem:[%s2896_s22 + $0x68] sm:$0xff] %v1742_v17 }
 0x5ea   : > { %2321 = shalt.err (!%p2318_p3)
}
 0x5eb   : > { %s2322_s16 = scalar_lea.hbm %s2916_s28, 2048  ;;  %s2326_s23 = scalar_lea.hbm %s2975_s9, 4096 }
 0x5ec   : > { %p2323_p4 = scmp.ne.s32.totalorder %s2916_s28, %s2322_s16  ;;  %p2327_p9 = scmp.lt.u32.totalorder %s2916_s28, %s2975_s9 }
 0x5ed   : > { %p2328_p10 = scmp.lt.u32.totalorder %s2326_s23, %s2322_s16  ;;  %p2330_p12 = scmp.lt.u32.totalorder %s2322_s16, %s2916_s28 }
 0x5ee   : > { %p2324_p7 = pnand %p2323_p4, %p2465_p5 }
 0x5ef   : > { %p2329_p11 = por %p2328_p10, %p2327_p9 }
 0x5f0   : > { %p2325_p8 = pneg %p2324_p7 }
 0x5f1   : > { %p2331_p13 = por %p2330_p12, %p2329_p11 }
 0x5f3   : > { %p2332_p0 = pnand %p2331_p13, %p2325_p8 }
 0x5f5   : > { %2335 = shalt.err (!%p2332_p0)
}
 0x5f6   : > { %s2375_s29 = smov 128   ;;  %s2376_s14 = smov 8  }
 0x5f7   : > { %2163 = dma.vmem_to_hbm [thread:$0]  (%p2465_p5), %s2918_s24, 2048, %s2916_s28, %s2925_s13, %s2375_s29, %s2375_s29, %s2376_s14  }
 0x5f8 PF: > { %p2169_p1 = scmp.ge.s32.totalorder %s2370_s12, 2  ;;  %s1798_s17 = sand.u32 1, %s2358_s30  }
 0x5f9   : > { %s1799_s25 = scalar_lea.sflag [#allocation3], %s1798_s17 }
 0x5fa   : > { %p2166_p2 = pnand %p2169_p1, %p2469_p6 }
 0x5fc   : > { %2353 = dma.done.wait (!%p2166_p2), %s1799_s25, 2048  }
 0x5fd   : > { %2355 = vsyncadd (!%p2166_p2), %s1799_s25, 4294965248  ;;  %p19_p3 = scmp.ge.s32.totalorder %s2452_s15, 4   ;;  %s2978_s30 = smov %s2362_s10 }
 0x5fe   : > { %s2979_s10 = smov %s2366_s11  ;;  %s2980_s11 = smov %s2463_s18 }
 0x5ff   : > { %s2981_s12 = smov %s2452_s15  ;;  %21 = sbr.rel (!%p19_p3) target bundleno = 3 (0x3), region = 94 }
 0x606   :  { %1804 = vsyncpa [#allocation3], 1 }
 0x607   :  { %1806 = vsyncpa [#allocation3 + $0x1], 1 }

</bundles_post_ra>
